<compile_context>
chip_gen: v5e
topology: v5e:2x2
jax: 0.10.0
libtpu: 0.0.40
codegen_flags: <defaults>
</compile_context>

<pallas_src>
import functools

import jax
import jax.numpy as jnp
from jax.experimental import pallas as pl
from jax.experimental.pallas import tpu as pltpu

# ---- small synthetic config (stands in for deberta-v3-large) ----
VOCAB = 50
HIDDEN = 128                      # lane-dense (multiple of 128)
N_HEADS = 2
HEAD_DIM = HIDDEN // N_HEADS      # 64
N_LAYERS = 2
INTERMEDIATE = 256
SEQ = 16
BATCH = 2
NUM_LABELS = 3
CLS_PAD = 128                     # classifier output padded to a full lane width
LN_EPS = 1e-7                     # DebertaV2 layer_norm_eps
TILE_M = 16                       # row tile for linear / LN kernels

ACT_DTYPE = jnp.bfloat16          # MXU-friendly activation / weight dtype


# ----------------------------- Pallas kernels ------------------------------


def _linear_kernel(x_ref, w_ref, b_ref, o_ref, *, activation):
    # bf16 x bf16 -> f32 accumulate on the MXU; epilogue in f32.
    acc = jnp.dot(x_ref[...], w_ref[...], preferred_element_type=jnp.float32)
    acc = acc + b_ref[...].astype(jnp.float32)
    if activation == "gelu":
        # TODO(synk): HF DebertaV2 'gelu' is the exact erf-GELU; tanh approx used.
        acc = jax.nn.gelu(acc, approximate=True)
    o_ref[...] = acc.astype(o_ref.dtype)


def pallas_linear(x, w, b, activation=None, tile_m=TILE_M, out_dtype=None):
    """x: [M, K] bf16, w: [K, N] bf16, b: [N] f32 -> [M, N] (optional fused GELU)."""
    M, K = x.shape
    N = w.shape[1]
    out_dtype = out_dtype or x.dtype
    tm = tile_m if (M % tile_m == 0) else M
    kernel = functools.partial(_linear_kernel, activation=activation)
    return pl.pallas_call(
        kernel,
        out_shape=jax.ShapeDtypeStruct((M, N), out_dtype),
        grid=(M // tm,),
        in_specs=[
            pl.BlockSpec((tm, K), lambda i: (i, 0)),
            pl.BlockSpec((K, N), lambda i: (0, 0)),
            pl.BlockSpec((1, N), lambda i: (0, 0)),
        ],
        out_specs=pl.BlockSpec((tm, N), lambda i: (i, 0)),
        compiler_params=pltpu.CompilerParams(dimension_semantics=("parallel",)),
    )(x, w, b.reshape(1, N))


def _linear_res_ln_kernel(x_ref, w_ref, b_ref, r_ref, g_ref, beta_ref, o_ref):
    # Fused: y = LayerNorm(x @ w + b + residual) * gamma + beta
    acc = jnp.dot(x_ref[...], w_ref[...], preferred_element_type=jnp.float32)
    acc = acc + b_ref[...].astype(jnp.float32) + r_ref[...].astype(jnp.float32)
    mean = jnp.mean(acc, axis=-1, keepdims=True)
    var = jnp.mean(jnp.square(acc - mean), axis=-1, keepdims=True)
    y = (acc - mean) * jax.lax.rsqrt(var + LN_EPS)
    o_ref[...] = (y * g_ref[...] + beta_ref[...]).astype(o_ref.dtype)


def pallas_linear_residual_ln(x, w, b, residual, gamma, beta, tile_m=TILE_M):
    """LayerNorm(x @ w + b + residual); x: [M, K], w: [K, N], residual: [M, N]."""
    M, K = x.shape
    N = w.shape[1]
    tm = tile_m if (M % tile_m == 0) else M
    return pl.pallas_call(
        _linear_res_ln_kernel,
        out_shape=jax.ShapeDtypeStruct((M, N), residual.dtype),
        grid=(M // tm,),
        in_specs=[
            pl.BlockSpec((tm, K), lambda i: (i, 0)),
            pl.BlockSpec((K, N), lambda i: (0, 0)),
            pl.BlockSpec((1, N), lambda i: (0, 0)),
            pl.BlockSpec((tm, N), lambda i: (i, 0)),
            pl.BlockSpec((1, N), lambda i: (0, 0)),
            pl.BlockSpec((1, N), lambda i: (0, 0)),
        ],
        out_specs=pl.BlockSpec((tm, N), lambda i: (i, 0)),
        compiler_params=pltpu.CompilerParams(dimension_semantics=("parallel",)),
    )(x, w, b.reshape(1, N), residual, gamma.reshape(1, N), beta.reshape(1, N))


def _layernorm_kernel(x_ref, g_ref, b_ref, o_ref):
    x = x_ref[...].astype(jnp.float32)
    mean = jnp.mean(x, axis=-1, keepdims=True)
    var = jnp.mean(jnp.square(x - mean), axis=-1, keepdims=True)
    y = (x - mean) * jax.lax.rsqrt(var + LN_EPS)
    o_ref[...] = (y * g_ref[...] + b_ref[...]).astype(o_ref.dtype)


def pallas_layernorm(x, gamma, beta, tile_m=TILE_M):
    """x: [M, H]; LayerNorm over the last axis, tiled over rows."""
    M, H = x.shape
    tm = tile_m if (M % tile_m == 0) else M
    return pl.pallas_call(
        _layernorm_kernel,
        out_shape=jax.ShapeDtypeStruct((M, H), x.dtype),
        grid=(M // tm,),
        in_specs=[
            pl.BlockSpec((tm, H), lambda i: (i, 0)),
            pl.BlockSpec((1, H), lambda i: (0, 0)),
            pl.BlockSpec((1, H), lambda i: (0, 0)),
        ],
        out_specs=pl.BlockSpec((tm, H), lambda i: (i, 0)),
        compiler_params=pltpu.CompilerParams(dimension_semantics=("parallel",)),
    )(x, gamma.reshape(1, H), beta.reshape(1, H))


def _attention_kernel(qkv_ref, m_ref, o_ref, *, scale, n_heads, head_dim):
    # qkv_ref block: [1, S, 3*HIDDEN] (bf16); m_ref block: [1, 1, S] (f32)
    S = qkv_ref.shape[1]
    H = n_heads * head_dim
    qkv = qkv_ref[0]                       # [S, 3H] bf16
    mask = m_ref[0].astype(jnp.float32)    # [1, S] -> broadcast over key axis
    neg = jnp.finfo(jnp.float32).min

    head_outs = []
    for h in range(n_heads):               # static unroll (small head count)
        qh = qkv[:, h * head_dim:(h + 1) * head_dim]                   # [S, D]
        kh = qkv[:, H + h * head_dim:H + (h + 1) * head_dim]           # [S, D]
        vh = qkv[:, 2 * H + h * head_dim:2 * H + (h + 1) * head_dim]   # [S, D]
        s = jnp.dot(qh, kh.T, preferred_element_type=jnp.float32) * scale
        s = jnp.where(mask > 0.0, s, neg)                              # [S, S]
        s = s - jnp.max(s, axis=-1, keepdims=True)
        p = jnp.exp(s)
        p = p * pl.reciprocal(jnp.sum(p, axis=-1, keepdims=True), approx=True)
        head_outs.append(
            jnp.dot(p.astype(vh.dtype), vh, preferred_element_type=jnp.float32))
    out = jnp.concatenate(head_outs, axis=-1)            # lane-dense [S, H]
    o_ref[...] = out[None].astype(o_ref.dtype)


def pallas_attention(qkv, mask):
    """qkv: [B, S, 3*HIDDEN] bf16; mask: [B, 1, S] f32 -> [B, S, HIDDEN]."""
    B, S, threeH = qkv.shape
    kernel = functools.partial(
        _attention_kernel, scale=1.0 / (HEAD_DIM ** 0.5),
        n_heads=N_HEADS, head_dim=HEAD_DIM)
    return pl.pallas_call(
        kernel,
        out_shape=jax.ShapeDtypeStruct((B, S, HIDDEN), qkv.dtype),
        grid=(B,),
        in_specs=[
            pl.BlockSpec((1, S, threeH), lambda b: (b, 0, 0)),
            pl.BlockSpec((1, 1, S), lambda b: (b, 0, 0)),
        ],
        out_specs=pl.BlockSpec((1, S, HIDDEN), lambda b: (b, 0, 0)),
        compiler_params=pltpu.CompilerParams(dimension_semantics=("parallel",)),
    )(qkv, mask)


# ---------------------------- parameter init --------------------------------


def _dense(key, fan_in, fan_out):
    w = (jax.random.normal(key, (fan_in, fan_out), jnp.float32) * 0.02).astype(ACT_DTYPE)
    b = jnp.zeros((fan_out,), jnp.float32)
    return w, b


def init_params(key):
    keys = jax.random.split(key, 2 + N_LAYERS)
    word_emb = (jax.random.normal(keys[0], (VOCAB, HIDDEN), jnp.float32) * 0.02
                ).astype(ACT_DTYPE)

    # Classifier weights padded NUM_LABELS -> CLS_PAD for a lane-dense store.
    cls_w_small = (jax.random.normal(keys[1], (HIDDEN, NUM_LABELS), jnp.float32)
                   * 0.02).astype(ACT_DTYPE)
    cls_w = jnp.zeros((HIDDEN, CLS_PAD), ACT_DTYPE).at[:, :NUM_LABELS].set(cls_w_small)
    cls_b = jnp.zeros((CLS_PAD,), jnp.float32)

    params = {
        "word_emb": word_emb,
        "emb_ln_g": jnp.ones((HIDDEN,), jnp.float32),
        "emb_ln_b": jnp.zeros((HIDDEN,), jnp.float32),
        "cls_w": cls_w,
        "cls_b": cls_b,
        "layers": [],
    }
    for l in range(N_LAYERS):
        lk = jax.random.split(keys[2 + l], 6)
        wq, bq = _dense(lk[0], HIDDEN, HIDDEN)
        wk, bk = _dense(lk[1], HIDDEN, HIDDEN)
        wv, bv = _dense(lk[2], HIDDEN, HIDDEN)
        wo, bo = _dense(lk[3], HIDDEN, HIDDEN)
        wi, bi = _dense(lk[4], HIDDEN, INTERMEDIATE)
        wo2, bo2 = _dense(lk[5], INTERMEDIATE, HIDDEN)
        params["layers"].append({
            "w_qkv": jnp.concatenate([wq, wk, wv], axis=1),   # [H, 3H]
            "b_qkv": jnp.concatenate([bq, bk, bv], axis=0),   # [3H]
            "w_o": wo, "b_o": bo,
            "attn_ln_g": jnp.ones((HIDDEN,), jnp.float32),
            "attn_ln_b": jnp.zeros((HIDDEN,), jnp.float32),
            "w_i": wi, "b_i": bi,
            "w_o2": wo2, "b_o2": bo2,
            "ffn_ln_g": jnp.ones((HIDDEN,), jnp.float32),
            "ffn_ln_b": jnp.zeros((HIDDEN,), jnp.float32),
        })
    return params


# ------------------------------ forward pass --------------------------------


def deberta_classifier_forward(params, input_ids, attention_mask):
    B, S = input_ids.shape

    # Embedding lookup (glue) + embedding LayerNorm (Pallas).
    x = jnp.take(params["word_emb"], input_ids, axis=0)      # [B, S, H] bf16
    x2d = x.reshape(B * S, HIDDEN)
    x2d = pallas_layernorm(x2d, params["emb_ln_g"], params["emb_ln_b"])

    mask3 = attention_mask.astype(jnp.float32).reshape(B, 1, S)

    for layer in params["layers"]:
        # --- self-attention block (fused QKV; fused out-proj+residual+LN) ---
        qkv = pallas_linear(x2d, layer["w_qkv"], layer["b_qkv"])      # [B*S, 3H]
        ctx = pallas_attention(qkv.reshape(B, S, 3 * HIDDEN), mask3)  # [B, S, H]
        ctx2d = ctx.reshape(B * S, HIDDEN)
        x2d = pallas_linear_residual_ln(
            ctx2d, layer["w_o"], layer["b_o"], x2d,
            layer["attn_ln_g"], layer["attn_ln_b"])

        # --- feed-forward block (fused GELU; fused out-proj+residual+LN) ---
        h = pallas_linear(x2d, layer["w_i"], layer["b_i"], activation="gelu")
        x2d = pallas_linear_residual_ln(
            h, layer["w_o2"], layer["b_o2"], x2d,
            layer["ffn_ln_g"], layer["ffn_ln_b"])

    seq_out = x2d.reshape(B, S, HIDDEN)       # outputs[0]
    pooled = seq_out[:, 0]                    # [CLS]; dropout(p=0.1) = identity in eval
    logits_pad = pallas_linear(pooled, params["cls_w"], params["cls_b"],
                               tile_m=pooled.shape[0], out_dtype=jnp.float32)
    return logits_pad[:, :NUM_LABELS]         # labels=None path of the module


# ---------------------------------- main -------------------------------------


if __name__ == "__main__":
    key = jax.random.PRNGKey(0)
    k_params, k_ids = jax.random.split(key)

    params = init_params(k_params)

    input_ids = jax.random.randint(k_ids, (BATCH, SEQ), 0, VOCAB, dtype=jnp.int32)
    attention_mask = jnp.ones((BATCH, SEQ), jnp.int32).at[1, SEQ - 4:].set(0)

    fwd = jax.jit(deberta_classifier_forward)
    logits = fwd(params, input_ids, attention_mask)
    jax.block_until_ready(logits)

    assert logits.shape == (BATCH, NUM_LABELS)
    assert bool(jnp.all(jnp.isfinite(logits)))
    print("KERNEL_OK")
</pallas_src>

<mosaic_0001>
module attributes {stable_mosaic.version = 11 : i64} {
  func.func @_linear_kernel(%arg0: i32, %arg1: memref<16x128xbf16, #tpu.memory_space<vmem>>, %arg2: memref<128x384xbf16, #tpu.memory_space<vmem>>, %arg3: memref<1x384xf32, #tpu.memory_space<vmem>>, %arg4: memref<16x384xbf16, #tpu.memory_space<vmem>>) attributes {dimension_semantics = [#tpu.dimension_semantics<parallel>], iteration_bounds = array<i64: 2>, scalar_prefetch = 0 : i64, scratch_operands = 0 : i64, tpu.core_type = #tpu.core_type<tc>, window_params = [{transform_indices = @transform_0, window_bounds = array<i64: 16, 128>}, {pipeline_mode = #tpu.pipeline_mode<synchronous>, transform_indices = @transform_1, window_bounds = array<i64: 128, 384>}, {pipeline_mode = #tpu.pipeline_mode<synchronous>, transform_indices = @transform_2, window_bounds = array<i64: 1, 384>}, {transform_indices = @transform_3, window_bounds = array<i64: 16, 384>}]} {
    %c0 = arith.constant 0 : index
    %c0_0 = arith.constant 0 : index
    %0 = vector.load %arg1[%c0, %c0_0] : memref<16x128xbf16, #tpu.memory_space<vmem>>, vector<16x128xbf16>
    %c0_1 = arith.constant 0 : index
    %c0_2 = arith.constant 0 : index
    %1 = vector.load %arg2[%c0_1, %c0_2] : memref<128x384xbf16, #tpu.memory_space<vmem>>, vector<128x384xbf16>
    %cst = arith.constant dense<0.000000e+00> : vector<16x384xf32>
    %2 = tpu.matmul %0, %1, %cst {dimension_numbers = #tpu.dot_dimension_numbers<[1], [0], [0], [1], [0, 0, 1, 1], [], []>} : vector<16x128xbf16>, vector<128x384xbf16>, vector<16x384xf32> -> vector<16x384xf32>
    %c0_3 = arith.constant 0 : index
    %c0_4 = arith.constant 0 : index
    %3 = vector.load %arg3[%c0_3, %c0_4] : memref<1x384xf32, #tpu.memory_space<vmem>>, vector<1x384xf32>
    %4 = vector.broadcast %3 : vector<1x384xf32> to vector<16x384xf32>
    %5 = arith.addf %2, %4 : vector<16x384xf32>
    %6 = arith.truncf %5 : vector<16x384xf32> to vector<16x384xbf16>
    %c0_5 = arith.constant 0 : index
    %c0_6 = arith.constant 0 : index
    %7 = vector.load %arg4[%c0_5, %c0_6] : memref<16x384xbf16, #tpu.memory_space<vmem>>, vector<16x384xbf16>
    tpu.vector_store %arg4[%c0_5, %c0_6], %6 {strides = array<i32>} : memref<16x384xbf16, #tpu.memory_space<vmem>>, vector<16x384xbf16>,
    return
  }
  func.func @transform_0(%arg0: i32) -> (i32, i32) {
    %c0_i32 = arith.constant 0 : i32
    %c0_i32_0 = arith.constant 0 : i32
    return %arg0, %c0_i32 : i32, i32
  }
  func.func @transform_1(%arg0: i32) -> (i32, i32) {
    %c0_i32 = arith.constant 0 : i32
    %c0_i32_0 = arith.constant 0 : i32
    %c0_i32_1 = arith.constant 0 : i32
    return %c0_i32, %c0_i32_0 : i32, i32
  }
  func.func @transform_2(%arg0: i32) -> (i32, i32) {
    %c0_i32 = arith.constant 0 : i32
    %c0_i32_0 = arith.constant 0 : i32
    %c0_i32_1 = arith.constant 0 : i32
    return %c0_i32, %c0_i32_0 : i32, i32
  }
  func.func @transform_3(%arg0: i32) -> (i32, i32) {
    %c0_i32 = arith.constant 0 : i32
    %c0_i32_0 = arith.constant 0 : i32
    return %arg0, %c0_i32 : i32, i32
  }
}

module attributes {stable_mosaic.version = 11 : i64} {
  func.func @_layernorm_kernel(%arg0: i32, %arg1: memref<16x128xbf16, #tpu.memory_space<vmem>>, %arg2: memref<1x128xf32, #tpu.memory_space<vmem>>, %arg3: memref<1x128xf32, #tpu.memory_space<vmem>>, %arg4: memref<16x128xbf16, #tpu.memory_space<vmem>>) attributes {dimension_semantics = [#tpu.dimension_semantics<parallel>], iteration_bounds = array<i64: 2>, scalar_prefetch = 0 : i64, scratch_operands = 0 : i64, tpu.core_type = #tpu.core_type<tc>, window_params = [{transform_indices = @transform_0, window_bounds = array<i64: 16, 128>}, {pipeline_mode = #tpu.pipeline_mode<synchronous>, transform_indices = @transform_1, window_bounds = array<i64: 1, 128>}, {pipeline_mode = #tpu.pipeline_mode<synchronous>, transform_indices = @transform_2, window_bounds = array<i64: 1, 128>}, {transform_indices = @transform_3, window_bounds = array<i64: 16, 128>}]} {
    %c0 = arith.constant 0 : index
    %c0_0 = arith.constant 0 : index
    %0 = vector.load %arg1[%c0, %c0_0] : memref<16x128xbf16, #tpu.memory_space<vmem>>, vector<16x128xbf16>
    %1 = arith.extf %0 : vector<16x128xbf16> to vector<16x128xf32>
    %cst = arith.constant dense<0.000000e+00> : vector<16xf32>
    %2 = vector.multi_reduction <add>, %1, %cst [1] : vector<16x128xf32> to vector<16xf32>
    %3 = vector.shape_cast %2 : vector<16xf32> to vector<16x1xf32>
    %cst_1 = arith.constant 1.280000e+02 : f32
    %4 = vector.broadcast %cst_1 : f32 to vector<16x1xf32>
    %5 = arith.divf %3, %4 : vector<16x1xf32>
    %6 = vector.broadcast %5 : vector<16x1xf32> to vector<16x128xf32>
    %7 = arith.subf %1, %6 : vector<16x128xf32>
    %8 = arith.mulf %7, %7 : vector<16x128xf32>
    %cst_2 = arith.constant dense<0.000000e+00> : vector<16xf32>
    %9 = vector.multi_reduction <add>, %8, %cst_2 [1] : vector<16x128xf32> to vector<16xf32>
    %10 = vector.shape_cast %9 : vector<16xf32> to vector<16x1xf32>
    %cst_3 = arith.constant 1.280000e+02 : f32
    %11 = vector.broadcast %cst_3 : f32 to vector<16x1xf32>
    %12 = arith.divf %10, %11 : vector<16x1xf32>
    %13 = vector.broadcast %5 : vector<16x1xf32> to vector<16x128xf32>
    %14 = arith.subf %1, %13 : vector<16x128xf32>
    %cst_4 = arith.constant 1.000000e-07 : f32
    %15 = vector.broadcast %cst_4 : f32 to vector<16x1xf32>
    %16 = arith.addf %12, %15 : vector<16x1xf32>
    %17 = math.rsqrt %16 : vector<16x1xf32>
    %18 = vector.broadcast %17 : vector<16x1xf32> to vector<16x128xf32>
    %19 = arith.mulf %14, %18 : vector<16x128xf32>
    %c0_5 = arith.constant 0 : index
    %c0_6 = arith.constant 0 : index
    %20 = vector.load %arg2[%c0_5, %c0_6] : memref<1x128xf32, #tpu.memory_space<vmem>>, vector<1x128xf32>
    %21 = vector.broadcast %20 : vector<1x128xf32> to vector<16x128xf32>
    %22 = arith.mulf %19, %21 : vector<16x128xf32>
    %c0_7 = arith.constant 0 : index
    %c0_8 = arith.constant 0 : index
    %23 = vector.load %arg3[%c0_7, %c0_8] : memref<1x128xf32, #tpu.memory_space<vmem>>, vector<1x128xf32>
    %24 = vector.broadcast %23 : vector<1x128xf32> to vector<16x128xf32>
    %25 = arith.addf %22, %24 : vector<16x128xf32>
    %26 = arith.truncf %25 : vector<16x128xf32> to vector<16x128xbf16>
    %c0_9 = arith.constant 0 : index
    %c0_10 = arith.constant 0 : index
    %27 = vector.load %arg4[%c0_9, %c0_10] : memref<16x128xbf16, #tpu.memory_space<vmem>>, vector<16x128xbf16>
    tpu.vector_store %arg4[%c0_9, %c0_10], %26 {strides = array<i32>} : memref<16x128xbf16, #tpu.memory_space<vmem>>, vector<16x128xbf16>,
    return
  }
  func.func @transform_0(%arg0: i32) -> (i32, i32) {
    %c0_i32 = arith.constant 0 : i32
    %c0_i32_0 = arith.constant 0 : i32
    return %arg0, %c0_i32 : i32, i32
  }
  func.func @transform_1(%arg0: i32) -> (i32, i32) {
    %c0_i32 = arith.constant 0 : i32
    %c0_i32_0 = arith.constant 0 : i32
    %c0_i32_1 = arith.constant 0 : i32
    return %c0_i32, %c0_i32_0 : i32, i32
  }
  func.func @transform_2(%arg0: i32) -> (i32, i32) {
    %c0_i32 = arith.constant 0 : i32
    %c0_i32_0 = arith.constant 0 : i32
    %c0_i32_1 = arith.constant 0 : i32
    return %c0_i32, %c0_i32_0 : i32, i32
  }
  func.func @transform_3(%arg0: i32) -> (i32, i32) {
    %c0_i32 = arith.constant 0 : i32
    %c0_i32_0 = arith.constant 0 : i32
    return %arg0, %c0_i32 : i32, i32
  }
}

module attributes {stable_mosaic.version = 11 : i64} {
  func.func @_linear_res_ln_kernel(%arg0: i32, %arg1: memref<16x128xbf16, #tpu.memory_space<vmem>>, %arg2: memref<128x128xbf16, #tpu.memory_space<vmem>>, %arg3: memref<1x128xf32, #tpu.memory_space<vmem>>, %arg4: memref<16x128xbf16, #tpu.memory_space<vmem>>, %arg5: memref<1x128xf32, #tpu.memory_space<vmem>>, %arg6: memref<1x128xf32, #tpu.memory_space<vmem>>, %arg7: memref<16x128xbf16, #tpu.memory_space<vmem>>) attributes {dimension_semantics = [#tpu.dimension_semantics<parallel>], iteration_bounds = array<i64: 2>, scalar_prefetch = 0 : i64, scratch_operands = 0 : i64, tpu.core_type = #tpu.core_type<tc>, window_params = [{transform_indices = @transform_0, window_bounds = array<i64: 16, 128>}, {pipeline_mode = #tpu.pipeline_mode<synchronous>, transform_indices = @transform_1, window_bounds = array<i64: 128, 128>}, {pipeline_mode = #tpu.pipeline_mode<synchronous>, transform_indices = @transform_2, window_bounds = array<i64: 1, 128>}, {transform_indices = @transform_3, window_bounds = array<i64: 16, 128>}, {pipeline_mode = #tpu.pipeline_mode<synchronous>, transform_indices = @transform_4, window_bounds = array<i64: 1, 128>}, {pipeline_mode = #tpu.pipeline_mode<synchronous>, transform_indices = @transform_5, window_bounds = array<i64: 1, 128>}, {transform_indices = @transform_6, window_bounds = array<i64: 16, 128>}]} {
    %c0 = arith.constant 0 : index
    %c0_0 = arith.constant 0 : index
    %0 = vector.load %arg1[%c0, %c0_0] : memref<16x128xbf16, #tpu.memory_space<vmem>>, vector<16x128xbf16>
    %c0_1 = arith.constant 0 : index
    %c0_2 = arith.constant 0 : index
    %1 = vector.load %arg2[%c0_1, %c0_2] : memref<128x128xbf16, #tpu.memory_space<vmem>>, vector<128x128xbf16>
    %cst = arith.constant dense<0.000000e+00> : vector<16x128xf32>
    %2 = tpu.matmul %0, %1, %cst {dimension_numbers = #tpu.dot_dimension_numbers<[1], [0], [0], [1], [0, 0, 1, 1], [], []>} : vector<16x128xbf16>, vector<128x128xbf16>, vector<16x128xf32> -> vector<16x128xf32>
    %c0_3 = arith.constant 0 : index
    %c0_4 = arith.constant 0 : index
    %3 = vector.load %arg3[%c0_3, %c0_4] : memref<1x128xf32, #tpu.memory_space<vmem>>, vector<1x128xf32>
    %4 = vector.broadcast %3 : vector<1x128xf32> to vector<16x128xf32>
    %5 = arith.addf %2, %4 : vector<16x128xf32>
    %c0_5 = arith.constant 0 : index
    %c0_6 = arith.constant 0 : index
    %6 = vector.load %arg4[%c0_5, %c0_6] : memref<16x128xbf16, #tpu.memory_space<vmem>>, vector<16x128xbf16>
    %7 = arith.extf %6 : vector<16x128xbf16> to vector<16x128xf32>
    %8 = arith.addf %5, %7 : vector<16x128xf32>
    %cst_7 = arith.constant dense<0.000000e+00> : vector<16xf32>
    %9 = vector.multi_reduction <add>, %8, %cst_7 [1] : vector<16x128xf32> to vector<16xf32>
    %10 = vector.shape_cast %9 : vector<16xf32> to vector<16x1xf32>
    %cst_8 = arith.constant 1.280000e+02 : f32
    %11 = vector.broadcast %cst_8 : f32 to vector<16x1xf32>
    %12 = arith.divf %10, %11 : vector<16x1xf32>
    %13 = vector.broadcast %12 : vector<16x1xf32> to vector<16x128xf32>
    %14 = arith.subf %8, %13 : vector<16x128xf32>
    %15 = arith.mulf %14, %14 : vector<16x128xf32>
    %cst_9 = arith.constant dense<0.000000e+00> : vector<16xf32>
    %16 = vector.multi_reduction <add>, %15, %cst_9 [1] : vector<16x128xf32> to vector<16xf32>
    %17 = vector.shape_cast %16 : vector<16xf32> to vector<16x1xf32>
    %cst_10 = arith.constant 1.280000e+02 : f32
    %18 = vector.broadcast %cst_10 : f32 to vector<16x1xf32>
    %19 = arith.divf %17, %18 : vector<16x1xf32>
    %20 = vector.broadcast %12 : vector<16x1xf32> to vector<16x128xf32>
    %21 = arith.subf %8, %20 : vector<16x128xf32>
    %cst_11 = arith.constant 1.000000e-07 : f32
    %22 = vector.broadcast %cst_11 : f32 to vector<16x1xf32>
    %23 = arith.addf %19, %22 : vector<16x1xf32>
    %24 = math.rsqrt %23 : vector<16x1xf32>
    %25 = vector.broadcast %24 : vector<16x1xf32> to vector<16x128xf32>
    %26 = arith.mulf %21, %25 : vector<16x128xf32>
    %c0_12 = arith.constant 0 : index
    %c0_13 = arith.constant 0 : index
    %27 = vector.load %arg5[%c0_12, %c0_13] : memref<1x128xf32, #tpu.memory_space<vmem>>, vector<1x128xf32>
    %28 = vector.broadcast %27 : vector<1x128xf32> to vector<16x128xf32>
    %29 = arith.mulf %26, %28 : vector<16x128xf32>
    %c0_14 = arith.constant 0 : index
    %c0_15 = arith.constant 0 : index
    %30 = vector.load %arg6[%c0_14, %c0_15] : memref<1x128xf32, #tpu.memory_space<vmem>>, vector<1x128xf32>
    %31 = vector.broadcast %30 : vector<1x128xf32> to vector<16x128xf32>
    %32 = arith.addf %29, %31 : vector<16x128xf32>
    %33 = arith.truncf %32 : vector<16x128xf32> to vector<16x128xbf16>
    %c0_16 = arith.constant 0 : index
    %c0_17 = arith.constant 0 : index
    %34 = vector.load %arg7[%c0_16, %c0_17] : memref<16x128xbf16, #tpu.memory_space<vmem>>, vector<16x128xbf16>
    tpu.vector_store %arg7[%c0_16, %c0_17], %33 {strides = array<i32>} : memref<16x128xbf16, #tpu.memory_space<vmem>>, vector<16x128xbf16>,
    return
  }
  func.func @transform_0(%arg0: i32) -> (i32, i32) {
    %c0_i32 = arith.constant 0 : i32
    %c0_i32_0 = arith.constant 0 : i32
    return %arg0, %c0_i32 : i32, i32
  }
  func.func @transform_1(%arg0: i32) -> (i32, i32) {
    %c0_i32 = arith.constant 0 : i32
    %c0_i32_0 = arith.constant 0 : i32
    %c0_i32_1 = arith.constant 0 : i32
    return %c0_i32, %c0_i32_0 : i32, i32
  }
  func.func @transform_2(%arg0: i32) -> (i32, i32) {
    %c0_i32 = arith.constant 0 : i32
    %c0_i32_0 = arith.constant 0 : i32
    %c0_i32_1 = arith.constant 0 : i32
    return %c0_i32, %c0_i32_0 : i32, i32
  }
  func.func @transform_3(%arg0: i32) -> (i32, i32) {
    %c0_i32 = arith.constant 0 : i32
    %c0_i32_0 = arith.constant 0 : i32
    return %arg0, %c0_i32 : i32, i32
  }
  func.func @transform_4(%arg0: i32) -> (i32, i32) {
    %c0_i32 = arith.constant 0 : i32
    %c0_i32_0 = arith.constant 0 : i32
    %c0_i32_1 = arith.constant 0 : i32
    return %c0_i32, %c0_i32_0 : i32, i32
  }
  func.func @transform_5(%arg0: i32) -> (i32, i32) {
    %c0_i32 = arith.constant 0 : i32
    %c0_i32_0 = arith.constant 0 : i32
    %c0_i32_1 = arith.constant 0 : i32
    return %c0_i32, %c0_i32_0 : i32, i32
  }
  func.func @transform_6(%arg0: i32) -> (i32, i32) {
    %c0_i32 = arith.constant 0 : i32
    %c0_i32_0 = arith.constant 0 : i32
    return %arg0, %c0_i32 : i32, i32
  }
}

module attributes {stable_mosaic.version = 11 : i64} {
  func.func @_attention_kernel(%arg0: i32, %arg1: memref<1x16x384xbf16, #tpu.memory_space<vmem>>, %arg2: memref<1x1x16xf32, #tpu.memory_space<vmem>>, %arg3: memref<1x16x128xbf16, #tpu.memory_space<vmem>>) attributes {dimension_semantics = [#tpu.dimension_semantics<parallel>], iteration_bounds = array<i64: 2>, scalar_prefetch = 0 : i64, scratch_operands = 0 : i64, tpu.core_type = #tpu.core_type<tc>, window_params = [{transform_indices = @transform_0, window_bounds = array<i64: 1, 16, 384>}, {transform_indices = @transform_1, window_bounds = array<i64: 1, 1, 16>}, {transform_indices = @transform_2, window_bounds = array<i64: 1, 16, 128>}]} {
    %c0 = arith.constant 0 : index
    %c0_0 = arith.constant 0 : index
    %c0_1 = arith.constant 0 : index
    %0 = vector.load %arg1[%c0, %c0_0, %c0_1] : memref<1x16x384xbf16, #tpu.memory_space<vmem>>, vector<1x16x384xbf16>
    %1 = vector.shape_cast %0 : vector<1x16x384xbf16> to vector<16x384xbf16>
    %c0_2 = arith.constant 0 : index
    %c0_3 = arith.constant 0 : index
    %c0_4 = arith.constant 0 : index
    %2 = vector.load %arg2[%c0_2, %c0_3, %c0_4] : memref<1x1x16xf32, #tpu.memory_space<vmem>>, vector<1x1x16xf32>
    %3 = vector.shape_cast %2 : vector<1x1x16xf32> to vector<1x16xf32>
    %4 = vector.extract_strided_slice %1 {offsets = [0, 0], sizes = [16, 64], strides = [1, 1]} : vector<16x384xbf16> to vector<16x64xbf16>
    %5 = vector.extract_strided_slice %1 {offsets = [0, 128], sizes = [16, 64], strides = [1, 1]} : vector<16x384xbf16> to vector<16x64xbf16>
    %6 = vector.extract_strided_slice %1 {offsets = [0, 256], sizes = [16, 64], strides = [1, 1]} : vector<16x384xbf16> to vector<16x64xbf16>
    %7 = tpu.transpose %5, [1, 0] : vector<16x64xbf16> -> vector<64x16xbf16>
    %cst = arith.constant dense<0.000000e+00> : vector<16x16xf32>
    %8 = tpu.matmul %4, %7, %cst {dimension_numbers = #tpu.dot_dimension_numbers<[1], [0], [0], [1], [0, 0, 1, 1], [], []>} : vector<16x64xbf16>, vector<64x16xbf16>, vector<16x16xf32> -> vector<16x16xf32>
    %cst_5 = arith.constant 1.250000e-01 : f32
    %9 = vector.broadcast %cst_5 : f32 to vector<16x16xf32>
    %10 = arith.mulf %8, %9 : vector<16x16xf32>
    %cst_6 = arith.constant 0.000000e+00 : f32
    %11 = vector.broadcast %cst_6 : f32 to vector<1x16xf32>
    %12 = arith.cmpf ogt, %3, %11 : vector<1x16xf32>
    %cst_7 = arith.constant -3.40282347E+38 : f32
    %13 = vector.shape_cast %12 : vector<1x16xi1> to vector<1x16xi1>
    %14 = vector.broadcast %13 : vector<1x16xi1> to vector<16x16xi1>
    %15 = vector.broadcast %cst_7 : f32 to vector<16x16xf32>
    %16 = arith.select %14, %10, %15 : vector<16x16xi1>, vector<16x16xf32>
    %cst_8 = arith.constant dense<0xFF800000> : vector<16xf32>
    %17 = vector.multi_reduction <maximumf>, %16, %cst_8 [1] : vector<16x16xf32> to vector<16xf32>
    %18 = vector.shape_cast %17 : vector<16xf32> to vector<16x1xf32>
    %19 = vector.broadcast %18 : vector<16x1xf32> to vector<16x16xf32>
    %20 = arith.subf %16, %19 : vector<16x16xf32>
    %21 = math.exp %20 : vector<16x16xf32>
    %cst_9 = arith.constant dense<0.000000e+00> : vector<16xf32>
    %22 = vector.multi_reduction <add>, %21, %cst_9 [1] : vector<16x16xf32> to vector<16xf32>
    %23 = vector.shape_cast %22 : vector<16xf32> to vector<16x1xf32>
    %24 = tpu.reciprocal %23 {approx = true} : vector<16x1xf32> -> vector<16x1xf32>
    %25 = vector.broadcast %24 : vector<16x1xf32> to vector<16x16xf32>
    %26 = arith.mulf %21, %25 : vector<16x16xf32>
    %27 = arith.truncf %26 : vector<16x16xf32> to vector<16x16xbf16>
    %cst_10 = arith.constant dense<0.000000e+00> : vector<16x64xf32>
    %28 = tpu.matmul %27, %6, %cst_10 {dimension_numbers = #tpu.dot_dimension_numbers<[1], [0], [0], [1], [0, 0, 1, 1], [], []>} : vector<16x16xbf16>, vector<16x64xbf16>, vector<16x64xf32> -> vector<16x64xf32>
    %29 = vector.extract_strided_slice %1 {offsets = [0, 64], sizes = [16, 64], strides = [1, 1]} : vector<16x384xbf16> to vector<16x64xbf16>
    %30 = vector.extract_strided_slice %1 {offsets = [0, 192], sizes = [16, 64], strides = [1, 1]} : vector<16x384xbf16> to vector<16x64xbf16>
    %31 = vector.extract_strided_slice %1 {offsets = [0, 320], sizes = [16, 64], strides = [1, 1]} : vector<16x384xbf16> to vector<16x64xbf16>
    %32 = tpu.transpose %30, [1, 0] : vector<16x64xbf16> -> vector<64x16xbf16>
    %cst_11 = arith.constant dense<0.000000e+00> : vector<16x16xf32>
    %33 = tpu.matmul %29, %32, %cst_11 {dimension_numbers = #tpu.dot_dimension_numbers<[1], [0], [0], [1], [0, 0, 1, 1], [], []>} : vector<16x64xbf16>, vector<64x16xbf16>, vector<16x16xf32> -> vector<16x16xf32>
    %cst_12 = arith.constant 1.250000e-01 : f32
    %34 = vector.broadcast %cst_12 : f32 to vector<16x16xf32>
    %35 = arith.mulf %33, %34 : vector<16x16xf32>
    %cst_13 = arith.constant 0.000000e+00 : f32
    %36 = vector.broadcast %cst_13 : f32 to vector<1x16xf32>
    %37 = arith.cmpf ogt, %3, %36 : vector<1x16xf32>
    %cst_14 = arith.constant -3.40282347E+38 : f32
    %38 = vector.shape_cast %37 : vector<1x16xi1> to vector<1x16xi1>
    %39 = vector.broadcast %38 : vector<1x16xi1> to vector<16x16xi1>
    %40 = vector.broadcast %cst_14 : f32 to vector<16x16xf32>
    %41 = arith.select %39, %35, %40 : vector<16x16xi1>, vector<16x16xf32>
    %cst_15 = arith.constant dense<0xFF800000> : vector<16xf32>
    %42 = vector.multi_reduction <maximumf>, %41, %cst_15 [1] : vector<16x16xf32> to vector<16xf32>
    %43 = vector.shape_cast %42 : vector<16xf32> to vector<16x1xf32>
    %44 = vector.broadcast %43 : vector<16x1xf32> to vector<16x16xf32>
    %45 = arith.subf %41, %44 : vector<16x16xf32>
    %46 = math.exp %45 : vector<16x16xf32>
    %cst_16 = arith.constant dense<0.000000e+00> : vector<16xf32>
    %47 = vector.multi_reduction <add>, %46, %cst_16 [1] : vector<16x16xf32> to vector<16xf32>
    %48 = vector.shape_cast %47 : vector<16xf32> to vector<16x1xf32>
    %49 = tpu.reciprocal %48 {approx = true} : vector<16x1xf32> -> vector<16x1xf32>
    %50 = vector.broadcast %49 : vector<16x1xf32> to vector<16x16xf32>
    %51 = arith.mulf %46, %50 : vector<16x16xf32>
    %52 = arith.truncf %51 : vector<16x16xf32> to vector<16x16xbf16>
    %cst_17 = arith.constant dense<0.000000e+00> : vector<16x64xf32>
    %53 = tpu.matmul %52, %31, %cst_17 {dimension_numbers = #tpu.dot_dimension_numbers<[1], [0], [0], [1], [0, 0, 1, 1], [], []>} : vector<16x16xbf16>, vector<16x64xbf16>, vector<16x64xf32> -> vector<16x64xf32>
    %54 = tpu.concatenate %28, %53 in 1 : vector<16x64xf32>, vector<16x64xf32> -> vector<16x128xf32>
    %55 = vector.shape_cast %54 : vector<16x128xf32> to vector<1x16x128xf32>
    %56 = arith.truncf %55 : vector<1x16x128xf32> to vector<1x16x128xbf16>
    %c0_18 = arith.constant 0 : index
    %c0_19 = arith.constant 0 : index
    %c0_20 = arith.constant 0 : index
    %57 = vector.load %arg3[%c0_18, %c0_19, %c0_20] : memref<1x16x128xbf16, #tpu.memory_space<vmem>>, vector<1x16x128xbf16>
    tpu.vector_store %arg3[%c0_18, %c0_19, %c0_20], %56 {strides = array<i32>} : memref<1x16x128xbf16, #tpu.memory_space<vmem>>, vector<1x16x128xbf16>,
    return
  }
  func.func @transform_0(%arg0: i32) -> (i32, i32, i32) {
    %c0_i32 = arith.constant 0 : i32
    %c0_i32_0 = arith.constant 0 : i32
    %c0_i32_1 = arith.constant 0 : i32
    return %arg0, %c0_i32, %c0_i32_0 : i32, i32, i32
  }
  func.func @transform_1(%arg0: i32) -> (i32, i32, i32) {
    %c0_i32 = arith.constant 0 : i32
    %c0_i32_0 = arith.constant 0 : i32
    %c0_i32_1 = arith.constant 0 : i32
    return %arg0, %c0_i32, %c0_i32_0 : i32, i32, i32
  }
  func.func @transform_2(%arg0: i32) -> (i32, i32, i32) {
    %c0_i32 = arith.constant 0 : i32
    %c0_i32_0 = arith.constant 0 : i32
    %c0_i32_1 = arith.constant 0 : i32
    return %arg0, %c0_i32, %c0_i32_0 : i32, i32, i32
  }
}

module attributes {stable_mosaic.version = 11 : i64} {
  func.func @_linear_res_ln_kernel(%arg0: i32, %arg1: memref<16x256xbf16, #tpu.memory_space<vmem>>, %arg2: memref<256x128xbf16, #tpu.memory_space<vmem>>, %arg3: memref<1x128xf32, #tpu.memory_space<vmem>>, %arg4: memref<16x128xbf16, #tpu.memory_space<vmem>>, %arg5: memref<1x128xf32, #tpu.memory_space<vmem>>, %arg6: memref<1x128xf32, #tpu.memory_space<vmem>>, %arg7: memref<16x128xbf16, #tpu.memory_space<vmem>>) attributes {dimension_semantics = [#tpu.dimension_semantics<parallel>], iteration_bounds = array<i64: 2>, scalar_prefetch = 0 : i64, scratch_operands = 0 : i64, tpu.core_type = #tpu.core_type<tc>, window_params = [{transform_indices = @transform_0, window_bounds = array<i64: 16, 256>}, {pipeline_mode = #tpu.pipeline_mode<synchronous>, transform_indices = @transform_1, window_bounds = array<i64: 256, 128>}, {pipeline_mode = #tpu.pipeline_mode<synchronous>, transform_indices = @transform_2, window_bounds = array<i64: 1, 128>}, {transform_indices = @transform_3, window_bounds = array<i64: 16, 128>}, {pipeline_mode = #tpu.pipeline_mode<synchronous>, transform_indices = @transform_4, window_bounds = array<i64: 1, 128>}, {pipeline_mode = #tpu.pipeline_mode<synchronous>, transform_indices = @transform_5, window_bounds = array<i64: 1, 128>}, {transform_indices = @transform_6, window_bounds = array<i64: 16, 128>}]} {
    %c0 = arith.constant 0 : index
    %c0_0 = arith.constant 0 : index
    %0 = vector.load %arg1[%c0, %c0_0] : memref<16x256xbf16, #tpu.memory_space<vmem>>, vector<16x256xbf16>
    %c0_1 = arith.constant 0 : index
    %c0_2 = arith.constant 0 : index
    %1 = vector.load %arg2[%c0_1, %c0_2] : memref<256x128xbf16, #tpu.memory_space<vmem>>, vector<256x128xbf16>
    %cst = arith.constant dense<0.000000e+00> : vector<16x128xf32>
    %2 = tpu.matmul %0, %1, %cst {dimension_numbers = #tpu.dot_dimension_numbers<[1], [0], [0], [1], [0, 0, 1, 1], [], []>} : vector<16x256xbf16>, vector<256x128xbf16>, vector<16x128xf32> -> vector<16x128xf32>
    %c0_3 = arith.constant 0 : index
    %c0_4 = arith.constant 0 : index
    %3 = vector.load %arg3[%c0_3, %c0_4] : memref<1x128xf32, #tpu.memory_space<vmem>>, vector<1x128xf32>
    %4 = vector.broadcast %3 : vector<1x128xf32> to vector<16x128xf32>
    %5 = arith.addf %2, %4 : vector<16x128xf32>
    %c0_5 = arith.constant 0 : index
    %c0_6 = arith.constant 0 : index
    %6 = vector.load %arg4[%c0_5, %c0_6] : memref<16x128xbf16, #tpu.memory_space<vmem>>, vector<16x128xbf16>
    %7 = arith.extf %6 : vector<16x128xbf16> to vector<16x128xf32>
    %8 = arith.addf %5, %7 : vector<16x128xf32>
    %cst_7 = arith.constant dense<0.000000e+00> : vector<16xf32>
    %9 = vector.multi_reduction <add>, %8, %cst_7 [1] : vector<16x128xf32> to vector<16xf32>
    %10 = vector.shape_cast %9 : vector<16xf32> to vector<16x1xf32>
    %cst_8 = arith.constant 1.280000e+02 : f32
    %11 = vector.broadcast %cst_8 : f32 to vector<16x1xf32>
    %12 = arith.divf %10, %11 : vector<16x1xf32>
    %13 = vector.broadcast %12 : vector<16x1xf32> to vector<16x128xf32>
    %14 = arith.subf %8, %13 : vector<16x128xf32>
    %15 = arith.mulf %14, %14 : vector<16x128xf32>
    %cst_9 = arith.constant dense<0.000000e+00> : vector<16xf32>
    %16 = vector.multi_reduction <add>, %15, %cst_9 [1] : vector<16x128xf32> to vector<16xf32>
    %17 = vector.shape_cast %16 : vector<16xf32> to vector<16x1xf32>
    %cst_10 = arith.constant 1.280000e+02 : f32
    %18 = vector.broadcast %cst_10 : f32 to vector<16x1xf32>
    %19 = arith.divf %17, %18 : vector<16x1xf32>
    %20 = vector.broadcast %12 : vector<16x1xf32> to vector<16x128xf32>
    %21 = arith.subf %8, %20 : vector<16x128xf32>
    %cst_11 = arith.constant 1.000000e-07 : f32
    %22 = vector.broadcast %cst_11 : f32 to vector<16x1xf32>
    %23 = arith.addf %19, %22 : vector<16x1xf32>
    %24 = math.rsqrt %23 : vector<16x1xf32>
    %25 = vector.broadcast %24 : vector<16x1xf32> to vector<16x128xf32>
    %26 = arith.mulf %21, %25 : vector<16x128xf32>
    %c0_12 = arith.constant 0 : index
    %c0_13 = arith.constant 0 : index
    %27 = vector.load %arg5[%c0_12, %c0_13] : memref<1x128xf32, #tpu.memory_space<vmem>>, vector<1x128xf32>
    %28 = vector.broadcast %27 : vector<1x128xf32> to vector<16x128xf32>
    %29 = arith.mulf %26, %28 : vector<16x128xf32>
    %c0_14 = arith.constant 0 : index
    %c0_15 = arith.constant 0 : index
    %30 = vector.load %arg6[%c0_14, %c0_15] : memref<1x128xf32, #tpu.memory_space<vmem>>, vector<1x128xf32>
    %31 = vector.broadcast %30 : vector<1x128xf32> to vector<16x128xf32>
    %32 = arith.addf %29, %31 : vector<16x128xf32>
    %33 = arith.truncf %32 : vector<16x128xf32> to vector<16x128xbf16>
    %c0_16 = arith.constant 0 : index
    %c0_17 = arith.constant 0 : index
    %34 = vector.load %arg7[%c0_16, %c0_17] : memref<16x128xbf16, #tpu.memory_space<vmem>>, vector<16x128xbf16>
    tpu.vector_store %arg7[%c0_16, %c0_17], %33 {strides = array<i32>} : memref<16x128xbf16, #tpu.memory_space<vmem>>, vector<16x128xbf16>,
    return
  }
  func.func @transform_0(%arg0: i32) -> (i32, i32) {
    %c0_i32 = arith.constant 0 : i32
    %c0_i32_0 = arith.constant 0 : i32
    return %arg0, %c0_i32 : i32, i32
  }
  func.func @transform_1(%arg0: i32) -> (i32, i32) {
    %c0_i32 = arith.constant 0 : i32
    %c0_i32_0 = arith.constant 0 : i32
    %c0_i32_1 = arith.constant 0 : i32
    return %c0_i32, %c0_i32_0 : i32, i32
  }
  func.func @transform_2(%arg0: i32) -> (i32, i32) {
    %c0_i32 = arith.constant 0 : i32
    %c0_i32_0 = arith.constant 0 : i32
    %c0_i32_1 = arith.constant 0 : i32
    return %c0_i32, %c0_i32_0 : i32, i32
  }
  func.func @transform_3(%arg0: i32) -> (i32, i32) {
    %c0_i32 = arith.constant 0 : i32
    %c0_i32_0 = arith.constant 0 : i32
    return %arg0, %c0_i32 : i32, i32
  }
  func.func @transform_4(%arg0: i32) -> (i32, i32) {
    %c0_i32 = arith.constant 0 : i32
    %c0_i32_0 = arith.constant 0 : i32
    %c0_i32_1 = arith.constant 0 : i32
    return %c0_i32, %c0_i32_0 : i32, i32
  }
  func.func @transform_5(%arg0: i32) -> (i32, i32) {
    %c0_i32 = arith.constant 0 : i32
    %c0_i32_0 = arith.constant 0 : i32
    %c0_i32_1 = arith.constant 0 : i32
    return %c0_i32, %c0_i32_0 : i32, i32
  }
  func.func @transform_6(%arg0: i32) -> (i32, i32) {
    %c0_i32 = arith.constant 0 : i32
    %c0_i32_0 = arith.constant 0 : i32
    return %arg0, %c0_i32 : i32, i32
  }
}

module attributes {stable_mosaic.version = 11 : i64} {
  func.func @_linear_kernel(%arg0: i32, %arg1: memref<16x128xbf16, #tpu.memory_space<vmem>>, %arg2: memref<128x384xbf16, #tpu.memory_space<vmem>>, %arg3: memref<1x384xf32, #tpu.memory_space<vmem>>, %arg4: memref<16x384xbf16, #tpu.memory_space<vmem>>) attributes {dimension_semantics = [#tpu.dimension_semantics<parallel>], iteration_bounds = array<i64: 2>, scalar_prefetch = 0 : i64, scratch_operands = 0 : i64, tpu.core_type = #tpu.core_type<tc>, window_params = [{transform_indices = @transform_0, window_bounds = array<i64: 16, 128>}, {pipeline_mode = #tpu.pipeline_mode<synchronous>, transform_indices = @transform_1, window_bounds = array<i64: 128, 384>}, {pipeline_mode = #tpu.pipeline_mode<synchronous>, transform_indices = @transform_2, window_bounds = array<i64: 1, 384>}, {transform_indices = @transform_3, window_bounds = array<i64: 16, 384>}]} {
    %c0 = arith.constant 0 : index
    %c0_0 = arith.constant 0 : index
    %0 = vector.load %arg1[%c0, %c0_0] : memref<16x128xbf16, #tpu.memory_space<vmem>>, vector<16x128xbf16>
    %c0_1 = arith.constant 0 : index
    %c0_2 = arith.constant 0 : index
    %1 = vector.load %arg2[%c0_1, %c0_2] : memref<128x384xbf16, #tpu.memory_space<vmem>>, vector<128x384xbf16>
    %cst = arith.constant dense<0.000000e+00> : vector<16x384xf32>
    %2 = tpu.matmul %0, %1, %cst {dimension_numbers = #tpu.dot_dimension_numbers<[1], [0], [0], [1], [0, 0, 1, 1], [], []>} : vector<16x128xbf16>, vector<128x384xbf16>, vector<16x384xf32> -> vector<16x384xf32>
    %c0_3 = arith.constant 0 : index
    %c0_4 = arith.constant 0 : index
    %3 = vector.load %arg3[%c0_3, %c0_4] : memref<1x384xf32, #tpu.memory_space<vmem>>, vector<1x384xf32>
    %4 = vector.broadcast %3 : vector<1x384xf32> to vector<16x384xf32>
    %5 = arith.addf %2, %4 : vector<16x384xf32>
    %6 = arith.truncf %5 : vector<16x384xf32> to vector<16x384xbf16>
    %c0_5 = arith.constant 0 : index
    %c0_6 = arith.constant 0 : index
    %7 = vector.load %arg4[%c0_5, %c0_6] : memref<16x384xbf16, #tpu.memory_space<vmem>>, vector<16x384xbf16>
    tpu.vector_store %arg4[%c0_5, %c0_6], %6 {strides = array<i32>} : memref<16x384xbf16, #tpu.memory_space<vmem>>, vector<16x384xbf16>,
    return
  }
  func.func @transform_0(%arg0: i32) -> (i32, i32) {
    %c0_i32 = arith.constant 0 : i32
    %c0_i32_0 = arith.constant 0 : i32
    return %arg0, %c0_i32 : i32, i32
  }
  func.func @transform_1(%arg0: i32) -> (i32, i32) {
    %c0_i32 = arith.constant 0 : i32
    %c0_i32_0 = arith.constant 0 : i32
    %c0_i32_1 = arith.constant 0 : i32
    return %c0_i32, %c0_i32_0 : i32, i32
  }
  func.func @transform_2(%arg0: i32) -> (i32, i32) {
    %c0_i32 = arith.constant 0 : i32
    %c0_i32_0 = arith.constant 0 : i32
    %c0_i32_1 = arith.constant 0 : i32
    return %c0_i32, %c0_i32_0 : i32, i32
  }
  func.func @transform_3(%arg0: i32) -> (i32, i32) {
    %c0_i32 = arith.constant 0 : i32
    %c0_i32_0 = arith.constant 0 : i32
    return %arg0, %c0_i32 : i32, i32
  }
}

module attributes {stable_mosaic.version = 11 : i64} {
  func.func @_linear_kernel(%arg0: i32, %arg1: memref<16x128xbf16, #tpu.memory_space<vmem>>, %arg2: memref<128x256xbf16, #tpu.memory_space<vmem>>, %arg3: memref<1x256xf32, #tpu.memory_space<vmem>>, %arg4: memref<16x256xbf16, #tpu.memory_space<vmem>>) attributes {dimension_semantics = [#tpu.dimension_semantics<parallel>], iteration_bounds = array<i64: 2>, scalar_prefetch = 0 : i64, scratch_operands = 0 : i64, tpu.core_type = #tpu.core_type<tc>, window_params = [{transform_indices = @transform_0, window_bounds = array<i64: 16, 128>}, {pipeline_mode = #tpu.pipeline_mode<synchronous>, transform_indices = @transform_1, window_bounds = array<i64: 128, 256>}, {pipeline_mode = #tpu.pipeline_mode<synchronous>, transform_indices = @transform_2, window_bounds = array<i64: 1, 256>}, {transform_indices = @transform_3, window_bounds = array<i64: 16, 256>}]} {
    %c0 = arith.constant 0 : index
    %c0_0 = arith.constant 0 : index
    %0 = vector.load %arg1[%c0, %c0_0] : memref<16x128xbf16, #tpu.memory_space<vmem>>, vector<16x128xbf16>
    %c0_1 = arith.constant 0 : index
    %c0_2 = arith.constant 0 : index
    %1 = vector.load %arg2[%c0_1, %c0_2] : memref<128x256xbf16, #tpu.memory_space<vmem>>, vector<128x256xbf16>
    %cst = arith.constant dense<0.000000e+00> : vector<16x256xf32>
    %2 = tpu.matmul %0, %1, %cst {dimension_numbers = #tpu.dot_dimension_numbers<[1], [0], [0], [1], [0, 0, 1, 1], [], []>} : vector<16x128xbf16>, vector<128x256xbf16>, vector<16x256xf32> -> vector<16x256xf32>
    %c0_3 = arith.constant 0 : index
    %c0_4 = arith.constant 0 : index
    %3 = vector.load %arg3[%c0_3, %c0_4] : memref<1x256xf32, #tpu.memory_space<vmem>>, vector<1x256xf32>
    %4 = vector.broadcast %3 : vector<1x256xf32> to vector<16x256xf32>
    %5 = arith.addf %2, %4 : vector<16x256xf32>
    %6 = arith.mulf %5, %5 : vector<16x256xf32>
    %7 = arith.mulf %5, %6 : vector<16x256xf32>
    %cst_5 = arith.constant 4.471500e-02 : f32
    %8 = vector.broadcast %cst_5 : f32 to vector<16x256xf32>
    %9 = arith.mulf %8, %7 : vector<16x256xf32>
    %10 = arith.addf %5, %9 : vector<16x256xf32>
    %cst_6 = arith.constant 0.797884583 : f32
    %11 = vector.broadcast %cst_6 : f32 to vector<16x256xf32>
    %12 = arith.mulf %11, %10 : vector<16x256xf32>
    %13 = math.tanh %12 : vector<16x256xf32>
    %cst_7 = arith.constant 1.000000e+00 : f32
    %14 = vector.broadcast %cst_7 : f32 to vector<16x256xf32>
    %15 = arith.addf %14, %13 : vector<16x256xf32>
    %cst_8 = arith.constant 5.000000e-01 : f32
    %16 = vector.broadcast %cst_8 : f32 to vector<16x256xf32>
    %17 = arith.mulf %16, %15 : vector<16x256xf32>
    %18 = arith.mulf %5, %17 : vector<16x256xf32>
    %19 = arith.truncf %18 : vector<16x256xf32> to vector<16x256xbf16>
    %c0_9 = arith.constant 0 : index
    %c0_10 = arith.constant 0 : index
    %20 = vector.load %arg4[%c0_9, %c0_10] : memref<16x256xbf16, #tpu.memory_space<vmem>>, vector<16x256xbf16>
    tpu.vector_store %arg4[%c0_9, %c0_10], %19 {strides = array<i32>} : memref<16x256xbf16, #tpu.memory_space<vmem>>, vector<16x256xbf16>,
    return
  }
  func.func @transform_0(%arg0: i32) -> (i32, i32) {
    %c0_i32 = arith.constant 0 : i32
    %c0_i32_0 = arith.constant 0 : i32
    return %arg0, %c0_i32 : i32, i32
  }
  func.func @transform_1(%arg0: i32) -> (i32, i32) {
    %c0_i32 = arith.constant 0 : i32
    %c0_i32_0 = arith.constant 0 : i32
    %c0_i32_1 = arith.constant 0 : i32
    return %c0_i32, %c0_i32_0 : i32, i32
  }
  func.func @transform_2(%arg0: i32) -> (i32, i32) {
    %c0_i32 = arith.constant 0 : i32
    %c0_i32_0 = arith.constant 0 : i32
    %c0_i32_1 = arith.constant 0 : i32
    return %c0_i32, %c0_i32_0 : i32, i32
  }
  func.func @transform_3(%arg0: i32) -> (i32, i32) {
    %c0_i32 = arith.constant 0 : i32
    %c0_i32_0 = arith.constant 0 : i32
    return %arg0, %c0_i32 : i32, i32
  }
}

module attributes {stable_mosaic.version = 11 : i64} {
  func.func @_linear_kernel(%arg0: i32, %arg1: memref<2x128xbf16, #tpu.memory_space<vmem>>, %arg2: memref<128x128xbf16, #tpu.memory_space<vmem>>, %arg3: memref<1x128xf32, #tpu.memory_space<vmem>>, %arg4: memref<2x128xf32, #tpu.memory_space<vmem>>) attributes {dimension_semantics = [#tpu.dimension_semantics<parallel>], iteration_bounds = array<i64: 1>, scalar_prefetch = 0 : i64, scratch_operands = 0 : i64, tpu.core_type = #tpu.core_type<tc>, window_params = [{transform_indices = @transform_0, window_bounds = array<i64: 2, 128>}, {pipeline_mode = #tpu.pipeline_mode<synchronous>, transform_indices = @transform_1, window_bounds = array<i64: 128, 128>}, {pipeline_mode = #tpu.pipeline_mode<synchronous>, transform_indices = @transform_2, window_bounds = array<i64: 1, 128>}, {transform_indices = @transform_3, window_bounds = array<i64: 2, 128>}]} {
    %c0 = arith.constant 0 : index
    %c0_0 = arith.constant 0 : index
    %0 = vector.load %arg1[%c0, %c0_0] : memref<2x128xbf16, #tpu.memory_space<vmem>>, vector<2x128xbf16>
    %c0_1 = arith.constant 0 : index
    %c0_2 = arith.constant 0 : index
    %1 = vector.load %arg2[%c0_1, %c0_2] : memref<128x128xbf16, #tpu.memory_space<vmem>>, vector<128x128xbf16>
    %cst = arith.constant dense<0.000000e+00> : vector<2x128xf32>
    %2 = tpu.matmul %0, %1, %cst {dimension_numbers = #tpu.dot_dimension_numbers<[1], [0], [0], [1], [0, 0, 1, 1], [], []>} : vector<2x128xbf16>, vector<128x128xbf16>, vector<2x128xf32> -> vector<2x128xf32>
    %c0_3 = arith.constant 0 : index
    %c0_4 = arith.constant 0 : index
    %3 = vector.load %arg3[%c0_3, %c0_4] : memref<1x128xf32, #tpu.memory_space<vmem>>, vector<1x128xf32>
    %4 = vector.broadcast %3 : vector<1x128xf32> to vector<2x128xf32>
    %5 = arith.addf %2, %4 : vector<2x128xf32>
    %c0_5 = arith.constant 0 : index
    %c0_6 = arith.constant 0 : index
    %6 = vector.load %arg4[%c0_5, %c0_6] : memref<2x128xf32, #tpu.memory_space<vmem>>, vector<2x128xf32>
    tpu.vector_store %arg4[%c0_5, %c0_6], %5 {strides = array<i32>} : memref<2x128xf32, #tpu.memory_space<vmem>>, vector<2x128xf32>,
    return
  }
  func.func @transform_0(%arg0: i32) -> (i32, i32) {
    %c0_i32 = arith.constant 0 : i32
    %c0_i32_0 = arith.constant 0 : i32
    return %arg0, %c0_i32 : i32, i32
  }
  func.func @transform_1(%arg0: i32) -> (i32, i32) {
    %c0_i32 = arith.constant 0 : i32
    %c0_i32_0 = arith.constant 0 : i32
    %c0_i32_1 = arith.constant 0 : i32
    return %c0_i32, %c0_i32_0 : i32, i32
  }
  func.func @transform_2(%arg0: i32) -> (i32, i32) {
    %c0_i32 = arith.constant 0 : i32
    %c0_i32_0 = arith.constant 0 : i32
    %c0_i32_1 = arith.constant 0 : i32
    return %c0_i32, %c0_i32_0 : i32, i32
  }
  func.func @transform_3(%arg0: i32) -> (i32, i32) {
    %c0_i32 = arith.constant 0 : i32
    %c0_i32_0 = arith.constant 0 : i32
    return %arg0, %c0_i32 : i32, i32
  }
}

</mosaic_0001>

<bundles_post_ra>
// kernel: deberta_classifier_forward.13
= control target key start
LH: loop header
LB: loop body
LE: loop exit
PB: predicated region body
PF: predicated region fallthrough
CT: control target
= control target key end

     0   :  { %s633_s12 = smov 0   ;;  %s803_s0 = inlined_call_operand.vmem [shape: bf16[32,128], index: 0, kind: input, shape index: {}]   ;;  %s804_s1 = inlined_call_operand.vmem [shape: bf16[128,384], index: 1, kind: input, shape index: {}]   ;;  %s805_s2 = inlined_call_operand.vmem [shape: f32[1,384], index: 2, kind: input, shape index: {}]   ;;  %s806_s3 = inlined_call_operand.vmem [shape: bf16[32,384], index: 3, kind: output, shape index: {}]  }
   0x1 LB: > { %s460_s13 = sadd.s32 4294967295, %s611_s12   ;;  %p464_p0 = scmp.ge.s32.totalorder %s611_s12, 1  ;;  %s611_s12 = sphi %s633_s12, %s13_s12  }
   0x2   : > { %p138_p1 = scmp.lt.s32.totalorder %s611_s12, 3 }
   0x4   : > { %p139_p2 = pnand %p464_p0, %p138_p1 }
   0x5   : > { %s465_s5 = sshll.u32 (!%p139_p2), %s460_s13, 1 }
   0x6   : > { %142 = sbr.rel (%p139_p2) target bundleno = 191 (0xbf), region = 32  ;;  %p164_p3 = scmp.lt.s32.totalorder (!%p139_p2), %s465_s5, 3 }
   0xb   : > { %v559_v0 = vld [vmem:[%s804_s1 + $0xa8] sm:$0xf]  ;;  %v594_v1 = vld [vmem:[%s804_s1 + $0xb0] sm:$0xf0]  ;;  %v593_v2 = vld [vmem:[%s804_s1 + $0xac] sm:$0xf] }
   0xc   : > { %v560_v3 = vor.u32 %v594_v1, %v559_v0  ;;  %v561_v4 = vld [vmem:[%s804_s1 + $0xb4] sm:$0xf0]  ;;  %v567_v5 = vld [vmem:[%s804_s1 + $0xb0] sm:$0xf]  ;;  %v595_v6 = vld [vmem:[%s804_s1 + $0xb8] sm:$0xf0] }
   0xd   : > { %v564_v7 = vor.u32 %v593_v2, %v561_v4  ;;  %v568_v8 = vor.u32 %v595_v6, %v567_v5  ;;  %v547_v9 = vld [vmem:[%s804_s1 + $0x90] sm:$0xf]  ;;  %v591_v10 = vld [vmem:[%s804_s1 + $0x98] sm:$0xf0]  ;;  %v590_v11 = vld [vmem:[%s804_s1 + $0x94] sm:$0xf] }
   0xe   : > { %352 = vmatpush.bf16.msra.mxu0 %v560_v3  ;;  %v548_v12 = vor.u32 %v591_v10, %v547_v9  ;;  %v549_v13 = vld [vmem:[%s804_s1 + $0x9c] sm:$0xf0]  ;;  %v555_v14 = vld [vmem:[%s804_s1 + $0x98] sm:$0xf]  ;;  %v592_v15 = vld [vmem:[%s804_s1 + $0xa0] sm:$0xf0] }
   0xf   : > { %366 = vmatpush.bf16.msra.mxu1 %v564_v7  ;;  %380 = vmatpush.bf16.msra.mxu2 %v568_v8  ;;  %v552_v16 = vor.u32 %v590_v11, %v549_v13  ;;  %v556_v17 = vor.u32 %v592_v15, %v555_v14  ;;  %v535_v18 = vld [vmem:[%s804_s1 + $0x78] sm:$0xf]  ;;  %v588_v19 = vld [vmem:[%s804_s1 + $0x80] sm:$0xf0]  ;;  %v587_v20 = vld [vmem:[%s804_s1 + $0x7c] sm:$0xf] }
  0x10   : > { %v537_v21 = vld [vmem:[%s804_s1 + $0x84] sm:$0xf0]  ;;  %v543_v22 = vld [vmem:[%s804_s1 + $0x80] sm:$0xf]  ;;  %v589_v23 = vld [vmem:[%s804_s1 + $0x88] sm:$0xf0]  ;;  %v536_v24 = vor.u32 %v588_v19, %v535_v18 }
  0x11   : > { %v540_v25 = vor.u32 %v587_v20, %v537_v21  ;;  %v544_v26 = vor.u32 %v589_v23, %v543_v22  ;;  %v523_v27 = vld [vmem:[%s804_s1 + $0x60] sm:$0xf]  ;;  %v585_v28 = vld [vmem:[%s804_s1 + $0x68] sm:$0xf0]  ;;  %v584_v29 = vld [vmem:[%s804_s1 + $0x64] sm:$0xf] }
  0x12   : > { %353 = vmatpush.bf16.msra.mxu0 %v548_v12  ;;  %v525_v30 = vld [vmem:[%s804_s1 + $0x6c] sm:$0xf0]  ;;  %v531_v31 = vld [vmem:[%s804_s1 + $0x68] sm:$0xf]  ;;  %v586_v32 = vld [vmem:[%s804_s1 + $0x70] sm:$0xf0]  ;;  %v524_v33 = vor.u32 %v585_v28, %v523_v27 }
  0x13   : > { %367 = vmatpush.bf16.msra.mxu1 %v552_v16  ;;  %381 = vmatpush.bf16.msra.mxu2 %v556_v17  ;;  %v528_v34 = vor.u32 %v584_v29, %v525_v30  ;;  %v532_v35 = vor.u32 %v586_v32, %v531_v31  ;;  %v511_v36 = vld [vmem:[%s804_s1 + $0x48] sm:$0xf]  ;;  %v582_v37 = vld [vmem:[%s804_s1 + $0x50] sm:$0xf0]  ;;  %v581_v38 = vld [vmem:[%s804_s1 + $0x4c] sm:$0xf] }
  0x14   : > { %v513_v39 = vld [vmem:[%s804_s1 + $0x54] sm:$0xf0]  ;;  %v519_v40 = vld [vmem:[%s804_s1 + $0x50] sm:$0xf]  ;;  %v583_v41 = vld [vmem:[%s804_s1 + $0x58] sm:$0xf0]  ;;  %v512_v42 = vor.u32 %v582_v37, %v511_v36 }
  0x15   : > { %v499_v43 = vld [vmem:[%s804_s1 + $0x30] sm:$0xf]  ;;  %v579_v44 = vld [vmem:[%s804_s1 + $0x38] sm:$0xf0]  ;;  %v516_v45 = vor.u32 %v581_v38, %v513_v39  ;;  %v520_v46 = vor.u32 %v583_v41, %v519_v40  ;;  %v578_v47 = vld [vmem:[%s804_s1 + $0x34] sm:$0xf] }
  0x16   : > { %354 = vmatpush.bf16.msra.mxu0 %v536_v24  ;;  %v501_v48 = vld [vmem:[%s804_s1 + $0x3c] sm:$0xf0]  ;;  %v507_v49 = vld [vmem:[%s804_s1 + $0x38] sm:$0xf]  ;;  %v580_v50 = vld [vmem:[%s804_s1 + $0x40] sm:$0xf0]  ;;  %v500_v51 = vor.u32 %v579_v44, %v499_v43 }
  0x17   : > { %368 = vmatpush.bf16.msra.mxu1 %v540_v25  ;;  %382 = vmatpush.bf16.msra.mxu2 %v544_v26  ;;  %v487_v52 = vld [vmem:[%s804_s1 + $0x18] sm:$0xf]  ;;  %v504_v53 = vor.u32 %v578_v47, %v501_v48  ;;  %v508_v54 = vor.u32 %v580_v50, %v507_v49  ;;  %v576_v55 = vld [vmem:[%s804_s1 + $0x20] sm:$0xf0]  ;;  %v575_v56 = vld [vmem:[%s804_s1 + $0x1c] sm:$0xf] }
  0x18   : > { %s808_s5 = smov (!%p164_p3, %s465_s5), 3  ;;  %v489_v57 = vld [vmem:[%s804_s1 + $0x24] sm:$0xf0]  ;;  %v495_v58 = vld [vmem:[%s804_s1 + $0x20] sm:$0xf]  ;;  %v488_v60 = vor.u32 %v576_v55, %v487_v52 }
  0x19   : > { %v577_v59 = vld [vmem:[%s804_s1 + $0x28] sm:$0xf0]  ;;  %v475_v61 = vld [vmem:[%s804_s1] sm:$0xf]  ;;  %v492_v62 = vor.u32 %v575_v56, %v489_v57  ;;  %v572_v1 = vld [vmem:[%s804_s1 + $0x4] sm:$0xf] }
  0x1a   : > { %355 = vmatpush.bf16.msra.mxu0 %v524_v33  ;;  %v496_v63 = vor.u32 %v577_v59, %v495_v58  ;;  %v573_v0 = vld [vmem:[%s804_s1 + $0x8] sm:$0xf0]  ;;  %s466_s29 = sshll.u32 %s808_s5, 2  ;;  %v477_v2 = vld [vmem:[%s804_s1 + $0xc] sm:$0xf0]  ;;  %s596_s16 = smul.u32 12, %s808_s5 }
  0x1b   : > { %369 = vmatpush.bf16.msra.mxu1 %v528_v34  ;;  %383 = vmatpush.bf16.msra.mxu2 %v532_v35  ;;  %v483_v3 = vld [vmem:[%s804_s1 + $0x8] sm:$0xf]  ;;  %v574_v4 = vld [vmem:[%s804_s1 + $0x10] sm:$0xf0]  ;;  %v476_v5 = vor.u32 %v573_v0, %v475_v61  ;;  %s167_s13 = scalar_lea.vmem %s803_s0, %s466_s29  ;;  %v480_v6 = vor.u32 %v572_v1, %v477_v2  ;;  %v210_v9 = vld [vmem:[%s805_s2] sm:$0x7] }
  0x1c   : > { %v484_v7 = vor.u32 %v574_v4, %v483_v3  ;;  %v571_v8 = vld [vmem:[%s167_s13] sm:$0xff]  ;;  %v212_v10 = vperm.slane %v210_v9, 0  ;;  %v213_v11 = vperm.slane %v210_v9, 1  ;;  %s174_s19 = scalar_lea.vmem %s806_s3, %s596_s16  ;;  %v214_v17 = vperm.slane %v210_v9, 2 }
  0x1e   : > { %356 = vmatpush.bf16.msra.mxu0 %v512_v42 }
  0x1f   : > { %370 = vmatpush.bf16.msra.mxu1 %v516_v45  ;;  %384 = vmatpush.bf16.msra.mxu2 %v520_v46 }
  0x22   : > { %357 = vmatpush.bf16.msra.mxu0 %v500_v51 }
  0x23   : > { %371 = vmatpush.bf16.msra.mxu1 %v504_v53  ;;  %385 = vmatpush.bf16.msra.mxu2 %v508_v54 }
  0x26   : > { %358 = vmatpush.bf16.msra.mxu0 %v488_v60 }
  0x27   : > { %372 = vmatpush.bf16.msra.mxu1 %v492_v62  ;;  %386 = vmatpush.bf16.msra.mxu2 %v496_v63 }
  0x2a   : > { %359 = vmatpush.bf16.msra.mxu0 %v476_v5 }
  0x2b   : > { %373 = vmatpush.bf16.msra.mxu1 %v480_v6  ;;  %387 = vmatpush.bf16.msra.mxu2 %v484_v7 }
  0x2d   : > { %360 = vmatmul.bf16.vlgmr.msra.gmra.mxu0 %v571_v8 }
  0x2e   : > { %374 = vmatmul.bf16.vlgmr.msra.gmra.mxu1 %v571_v8  ;;  %388 = vmatmul.bf16.vlgmr.msra.gmra.mxu2 %v571_v8 }
  0xaa   : > { %v361_v12 = vpop.f32.mrf.mxu0 }
  0xab   : > { %v362_v13 = vadd.f32 %v361_v12, %v212_v10  ;;  %v375_v14 = vpop.f32.mrf.mxu1 }
  0xac   : > { %v376_v15 = vadd.f32 %v375_v14, %v213_v11 }
  0xae   : > { %v394_v16 = vpack.c.bf16 %v376_v15, %v362_v13 }
  0xb0   : > { %398 = vst [vmem:[%s174_s19] sm:$0xff] %v394_v16 }
  0xb1   : > { %v389_v18 = vpop.f32.mrf.mxu2 }
  0xb2   : > { %v390_v19 = vadd.f32 %v389_v18, %v214_v17  ;;  %v363_v20 = vpop.f32.mrf.mxu0 }
  0xb3   : > { %v364_v21 = vadd.f32 %v363_v20, %v212_v10  ;;  %v377_v22 = vpop.f32.mrf.mxu1 }
  0xb4   : > { %v395_v23 = vpack.c.bf16 %v390_v19, %v390_v19  ;;  %v378_v24 = vadd.f32 %v377_v22, %v213_v11 }
  0xb6   : > { %399 = vst [vmem:[%s174_s19 + $0x8] sm:$0xf] %v395_v23  ;;  %v396_v25 = vpack.c.bf16 %v378_v24, %v364_v21 }
  0xb8   : > { %400 = vst [vmem:[%s174_s19 + $0xc] sm:$0xff] %v396_v25 }
  0xb9   : > { %v391_v26 = vpop.f32.mrf.mxu2 }
  0xba   : > { %v392_v27 = vadd.f32 %v391_v26, %v214_v17 }
  0xbc   : > { %v397_v28 = vpack.c.bf16 %v392_v27, %v392_v27 }
  0xbe   : > { %401 = vst [vmem:[%s174_s19 + $0x14] sm:$0xf] %v397_v28 }
  0xbf PF: > { %s13_s12 = sadd.s32 1, %s611_s12  }
  0xc0   : > { %p10_p4 = scmp.ge.s32.totalorder %s13_s12, 4  }
  0xc2   :  { %12 = sbr.rel (!%p10_p4) target bundleno = 1 (0x1), region = 62 }

// kernel: deberta_classifier_forward.15
= control target key start
LH: loop header
LB: loop body
LE: loop exit
PB: predicated region body
PF: predicated region fallthrough
CT: control target
= control target key end

     0   :  { %11 = vsyncpa [#allocation3], 0  ;;  %s714_s21 = smov 0   ;;  %s751_s0 = inlined_call_operand.vmem [shape: bf16[32,128], index: 0, kind: input, shape index: {}]   ;;  %s752_s1 = inlined_call_operand.hbm [shape: bf16[128,128], index: 1, kind: input, shape index: {}]   ;;  %s753_s2 = inlined_call_operand.vmem [shape: f32[1,128], index: 2, kind: input, shape index: {}]   ;;  %s754_s3 = inlined_call_operand.vmem [shape: bf16[32,128], index: 3, kind: input, shape index: {}]   ;;  %s755_s4 = inlined_call_operand.vmem [shape: f32[1,128], index: 4, kind: input, shape index: {}]   ;;  %s756_s5 = inlined_call_operand.vmem [shape: f32[1,128], index: 5, kind: input, shape index: {}]   ;;  %s757_s6 = inlined_call_operand.vmem [shape: bf16[32,128], index: 6, kind: output, shape index: {}]  }
   0x1 LB: > { %s195_s24 = sshll.u32 %s752_s1, 4  ;;  %s533_s25 = sadd.s32 4294967295, %s673_s21   ;;  %s673_s21 = sphi %s714_s21, %s17_s21   ;;  %s196_s24 = int_to_ptr.hbm [resolvable:$true] %s195_s24 }
   0x2   : > { %p535_p0 = scmp.ge.s32.totalorder %s673_s21, 1  ;;  %p184_p1 = scmp.lt.s32.totalorder %s673_s21, 3 }
   0x3   : > { %p610_p2 = scmp.eq.s32.totalorder %s533_s25, 0  ;;  %s675_s26 = smov [#allocation2]  }
   0x4   : > { %p185_p3 = pnand %p535_p0, %p184_p1  ;;  %s197_s27 = sshll.u32 %s675_s26, 4  ;;  %s198_s27 = int_to_ptr.vmem [resolvable:$true] %s197_s27 }
   0x5   : > { %s676_s28 = smov 64   ;;  %s677_s29 = smov 4  }
   0x6   : > { %p606_p4 = pneg %p185_p3  ;;  %240 = sbr.rel (%p185_p3) target bundleno = 451 (0x1c3), region = 44 }
   0x8   : > { %p607_p5 = pnand %p610_p2, %p606_p4 }
   0xa   : > { %609 = dma.hbm_to_vmem [thread:$0]  (!%p607_p5), %s196_s24, 1024, %s198_s27, [#allocation3], %s676_s28, %s676_s28, %s677_s29  }
   0xb   : > { %668 = dma.done.wait (%p610_p2), [#allocation3], 1024  }
   0xc   : > { %670 = vsyncadd (%p610_p2), [#allocation3], 4294966272  ;;  %v592_v0 = vld [vmem:[#allocation2 + $0x38] sm:$0xff]  ;;  %v591_v1 = vld [vmem:[#allocation2 + $0x30] sm:$0xff]  ;;  %s540_s30 = sshll.u32 %s533_s25, 1  ;;  %v678_v19 = vmov 128.0  }
   0xd   : > { %370 = vmatpush.bf16.msra.mxu0 %v592_v0  ;;  %v590_v2 = vld [vmem:[#allocation2 + $0x28] sm:$0xff]  ;;  %v589_v3 = vld [vmem:[#allocation2 + $0x20] sm:$0xff]  ;;  %v588_v4 = vld [vmem:[#allocation2 + $0x18] sm:$0xff]  ;;  %p277_p6 = scmp.lt.s32.totalorder %s540_s30, 3  ;;  %627 = vrcp.f32 %v678_v19 }
   0xe   : > { %v587_v5 = vld [vmem:[#allocation2 + $0x10] sm:$0xff]  ;;  %v586_v6 = vld [vmem:[#allocation2 + $0x8] sm:$0xff]  ;;  %v585_v7 = vld [vmem:[#allocation2] sm:$0xff] }
   0xf   : > { %s759_s30 = smov (!%p277_p6, %s540_s30), 3  ;;  %v624_v10 = vld [vmem:[%s753_s2] ss:$0 sm:$0xff] }
  0x10   : > { %s725_s7 = sshll.u32 %s759_s30, 2  ;;  %v625_v52 = vld [vmem:[%s755_s4] ss:$0 sm:$0xff] }
  0x11   : > { %371 = vmatpush.bf16.msra.mxu0 %v591_v1  ;;  %s280_s10 = scalar_lea.vmem %s751_s0, %s725_s7  ;;  %s286_s13 = scalar_lea.vmem %s754_s3, %s725_s7  ;;  %v626_v56 = vld [vmem:[%s756_s5] ss:$0 sm:$0xff] }
  0x12   : > { %v584_v8 = vld [vmem:[%s280_s10] sm:$0xff]  ;;  %s292_s23 = scalar_lea.vmem %s757_s6, %s725_s7 }
  0x13   : > { %v594_v9 = vld [vmem:[%s286_s13] sm:$0xff]   ;;  %v628_v20 = vpop.eup %627 }
  0x14   : > { %v595_v11 = vunpack.c.l.bf16 %v594_v9  ;;  %v596_v15 = vunpack.c.h.bf16 %v594_v9  ;;  %v395_v21 = vmul.f32 128.0, %v628_v20  ;;  %vm399_vm0 = vweird.f32 %v628_v20 }
  0x15   : > { %372 = vmatpush.bf16.msra.mxu0 %v590_v2 }
  0x16   : > { %v396_v22 = vsub.f32 1.0, %v395_v21 }
  0x18   : > { %v397_v23 = vmul.f32 %v628_v20, %v396_v22 }
  0x19   : > { %373 = vmatpush.bf16.msra.mxu0 %v589_v3 }
  0x1a   : > { %v398_v24 = vadd.f32 %v628_v20, %v397_v23 }
  0x1c   : > { %v400_v25 = vsel %vm399_vm0, %v628_v20, %v398_v24 }
  0x1d   : > { %374 = vmatpush.bf16.msra.mxu0 %v588_v4 }
  0x21   : > { %375 = vmatpush.bf16.msra.mxu0 %v587_v5 }
  0x25   : > { %376 = vmatpush.bf16.msra.mxu0 %v586_v6 }
  0x29   : > { %377 = vmatpush.bf16.msra.mxu0 %v585_v7 }
  0x2c   : > { %378 = vmatmul.bf16.vlgmr.msra.gmra.mxu0 %v584_v8 }
  0xa9   : > { %v379_v12 = vpop.f32.mrf.mxu0 }
  0xaa   : > { %v380_v13 = vadd.f32 %v624_v10, %v379_v12 }
  0xac   : > { %v388_v14 = vadd.f32 %v595_v11, %v380_v13 }
  0xae   : > { %390 = vadd.xlane.f32.xlu0 %v388_v14 }
  0xb1   : > { %v381_v16 = vpop.f32.mrf.mxu0 }
  0xb2   : > { %v382_v17 = vadd.f32 %v624_v10, %v381_v16 }
  0xb4   : > { %v389_v18 = vadd.f32 %v596_v15, %v382_v17 }
  0xb6   : > { %392 = vadd.xlane.f32.xlu0 %v389_v18 }
 0x121   : > { %v391_v26 = vpop.xlane.xlu0 %390 }
 0x122   : > { %v401_v27 = vmul.f32 %v400_v25, %v391_v26 }
 0x124   : > { %v403_v28 = vsub.f32 %v388_v14, %v401_v27 }
 0x126   : > { %v405_v29 = vmul.f32 %v403_v28, %v403_v28 }
 0x128   : > { %407 = vadd.xlane.f32.xlu1 %v405_v29 }
 0x129   : > { %v393_v30 = vpop.xlane.xlu0 %392 }
 0x12a   : > { %v402_v31 = vmul.f32 %v400_v25, %v393_v30 }
 0x12c   : > { %v404_v32 = vsub.f32 %v389_v18, %v402_v31 }
 0x12e   : > { %v406_v33 = vmul.f32 %v404_v32, %v404_v32 }
 0x130   : > { %409 = vadd.xlane.f32.xlu1 %v406_v33 }
 0x19b   : > { %v408_v34 = vpop.xlane.xlu1 %407 }
 0x19c   : > { %v411_v35 = vmul.f32 %v408_v34, %v400_v25 }
 0x19e   : > { %v413_v36 = vadd.f32 1e-07, %v411_v35 }
 0x1a0   : > { %629 = vrsqrt.f32 %v413_v36  ;;  %vm421_vm2 = vweird.f32 %v413_v36 }
 0x1a3   : > { %v410_v37 = vpop.xlane.xlu1 %409 }
 0x1a4   : > { %v412_v38 = vmul.f32 %v410_v37, %v400_v25 }
 0x1a6   : > { %v630_v39 = vpop.eup %629  ;;  %v414_v40 = vadd.f32 1e-07, %v412_v38 }
 0x1a7   : > { %v416_v41 = vmul.f32 %v630_v39, %v413_v36  ;;  %vm422_vm1 = vweird.f32 %v630_v39 }
 0x1a8   : > { %631 = vrsqrt.f32 %v414_v40  ;;  %vm423_vm3 = vmor %vm421_vm2, %vm422_vm1  ;;  %vm431_vm5 = vweird.f32 %v414_v40 }
 0x1a9   : > { %v417_v42 = vmul.f32 %v630_v39, %v416_v41 }
 0x1ab   : > { %v418_v43 = vmul.f32 0.5, %v417_v42 }
 0x1ad   : > { %v419_v44 = vsub.f32 1.5, %v418_v43 }
 0x1ae   : > { %v632_v45 = vpop.eup %631 }
 0x1af   : > { %v420_v46 = vmul.f32 %v630_v39, %v419_v44  ;;  %v426_v47 = vmul.f32 %v632_v45, %v414_v40  ;;  %vm432_vm4 = vweird.f32 %v632_v45 }
 0x1b0   : > { %vm433_vm6 = vmor %vm431_vm5, %vm432_vm4 }
 0x1b1   : > { %v427_v48 = vmul.f32 %v632_v45, %v426_v47  ;;  %v424_v49 = vsel %vm423_vm3, %v630_v39, %v420_v46 }
 0x1b2   : > { %v435_v53 = vmul.f32 %v424_v49, %v403_v28 }
 0x1b3   : > { %v428_v50 = vmul.f32 0.5, %v427_v48 }
 0x1b4   : > { %v441_v57 = vmul.f32 %v625_v52, %v435_v53 }
 0x1b5   : > { %v429_v51 = vsub.f32 1.5, %v428_v50 }
 0x1b6   : > { %v447_v60 = vadd.f32 %v626_v56, %v441_v57 }
 0x1b7   : > { %v430_v54 = vmul.f32 %v632_v45, %v429_v51 }
 0x1b9   : > { %v434_v55 = vsel %vm433_vm6, %v632_v45, %v430_v54 }
 0x1ba   : > { %v436_v58 = vmul.f32 %v434_v55, %v404_v32 }
 0x1bc   : > { %v442_v59 = vmul.f32 %v625_v52, %v436_v58 }
 0x1be   : > { %v448_v61 = vadd.f32 %v626_v56, %v442_v59 }
 0x1c0   : > { %v600_v62 = vpack.c.bf16 %v448_v61, %v447_v60 }
 0x1c2   : > { %601 = vst [vmem:[%s292_s23] sm:$0xff] %v600_v62  }
 0x1c3 PF: > { %s17_s21 = sadd.s32 1, %s673_s21  }
 0x1c4   : > { %p14_p7 = scmp.ge.s32.totalorder %s17_s21, 4  }
 0x1c6   :  { %16 = sbr.rel (!%p14_p7) target bundleno = 1 (0x1), region = 82 }
 0x1cb   :  { %475 = vsyncpa [#allocation3], 1 }
 0x1cc   :  { %477 = vsyncpa [#allocation3 + $0x1], 1 }

// kernel: deberta_classifier_forward.14
= control target key start
LH: loop header
LB: loop body
LE: loop exit
PB: predicated region body
PF: predicated region fallthrough
CT: control target
= control target key end

     0   :  { %s489_s9 = smov 0   ;;  %s554_s0 = inlined_call_operand.vmem [shape: bf16[2,16,384], index: 0, kind: input, shape index: {}]   ;;  %s555_s1 = inlined_call_operand.vmem [shape: f32[2,1,16], index: 1, kind: input, shape index: {}]   ;;  %s556_s2 = inlined_call_operand.vmem [shape: bf16[2,16,128], index: 2, kind: output, shape index: {}]  }
   0x1 LB: > { %s397_s10 = sadd.s32 4294967295, %s470_s9   ;;  %p401_p0 = scmp.ge.s32.totalorder %s470_s9, 1  ;;  %s470_s9 = sphi %s489_s9, %s12_s9  }
   0x2   : > { %p120_p1 = scmp.lt.s32.totalorder %s470_s9, 3 }
   0x4   : > { %p121_p2 = pnand %p401_p0, %p120_p1 }
   0x5   : > { %p145_p3 = scmp.lt.s32.totalorder (!%p121_p2), %s397_s10, 1  ;;  %s472_s15 = smov (!%p121_p2), 64  }
   0x6   : > { %124 = sbr.rel (%p121_p2) target bundleno = 803 (0x323), region = 28 }
   0xb   : > { %s560_s10 = smov (!%p145_p3, %s397_s10), 1  ;;  %vm172_vm0 = vcmask 523264   ;;  %v473_v11 = vmov 0   ;;  %vm201_vm2 = vcmask 130048  }
   0xc   : > { %s432_s11 = smul.u32 24, %s560_s10  ;;  %s152_s18 = scalar_lea.vmem %s555_s1, %s560_s10 }
   0xd   : > { %v163_v10 = vld [vmem:[%s152_s18] sm:$0x1]  ;;  %s423_s19 = sshll.u32 %s560_s10, 3 }
   0xe   : > { %s503_s14 = scalar_lea.vmem %s554_s0, %s432_s11  ;;  %vm195_vm1 = vcmp.gt.f32.partialorder %v163_v10, 0.0  ;;  %s157_s22 = scalar_lea.vmem %s556_s2, %s423_s19 }
   0xf   : > { %v424_v0 = vld [vmem:[%s503_s14 + $0x4] sm:$0xf]  ;;  %v409_v1 = vld [vmem:[%s503_s14 + $0xc] sm:$0xf0]  ;;  %v407_v3 = vld [vmem:[%s503_s14] sm:$0xf] }
  0x10   : > { %v412_v2 = vor.u32 %v424_v0, %v409_v1  ;;  %v425_v4 = vld [vmem:[%s503_s14 + $0x8] sm:$0xf0]  ;;  %v196_v12 = vsel %vm195_vm1, 1, %v473_v11  ;;  %v416_v34 = vld [vmem:[%s503_s14 + $0x8] sm:$0xf] }
  0x11   : > { %v408_v5 = vor.u32 %v425_v4, %v407_v3  ;;  %v197_v14 = vperm.slane %v196_v12, 0  ;;  %v426_v35 = vld [vmem:[%s503_s14 + $0x10] sm:$0xf0] }
  0x12   : > { %250 = vrot.lane.b32.xlu0 %v412_v2, %s472_s15  ;;  %v177_v6 = vsel %vm172_vm0, %v412_v2, 0  ;;  %v417_v37 = vor.u32 %v426_v35, %v416_v34 }
  0x13   : > { %186 = vmatpush.bf16.xpose.msra.mxu0 %v177_v6  ;;  %vm519_vm3 = vcmp.eq.s32.totalorder %v197_v14, 1 }
  0x14   : > { %241 = vmatpush.bf16.msra.mxu1 %v417_v37 }
  0x1a   : > { %248 = vrot.lane.b32.xlu0 %v408_v5, %s472_s15  ;;  %413 = vmatmul.msk.bf16.vlgmr.msra.gmra.mxu0 %vm172_vm0, %v408_v5 }
  0x84   : > { %v251_v7 = vpop.permute.xlu0 %250 }
  0x85   : > { %v256_v8 = vsel %vm172_vm0, %v251_v7, 0 }
  0x86   : > { %265 = vmatpush.bf16.xpose.msra.mxu2 %v256_v8 }
  0x8c   : > { %v249_v9 = vpop.permute.xlu0 %248 }
  0x8d   : > { %419 = vmatmul.msk.bf16.vlgmr.msra.gmra.mxu2 %vm172_vm0, %v249_v9 }
  0x97   : > { %v188_v13 = vpop.f32.mrf.mxu0 }
  0x98   : > { %v193_v15 = vmul.f32 0.125, %v188_v13 }
  0x9a   : > { %v199_v17 = vsel %vm519_vm3, %v193_v15, -3.4028235e+38 }
  0x9b   : > { %v202_v18 = vsel %vm201_vm2, %v199_v17, -inf }
  0x9c   : > { %203 = vmax.xlane.f32.xlu2 %v202_v18 }
  0x9f   : > { %v190_v19 = vpop.f32.mrf.mxu0 }
  0xa0   : > { %v194_v20 = vmul.f32 0.125, %v190_v19 }
  0xa2   : > { %v200_v21 = vsel %vm519_vm3, %v194_v20, -3.4028235e+38 }
  0xa3   : > { %v205_v22 = vsel %vm201_vm2, %v200_v21, -inf }
  0xa4   : > { %206 = vmax.xlane.f32.xlu2 %v205_v22 }
  0xbc   : > { %299 = vrot.lane.b32.xlu2 %v417_v37, %s472_s15 }
 0x10f   : > { %v204_v36 = vpop.xlane.xlu2 %203 }
 0x110   : > { %v267_v23 = vpop.f32.mrf.mxu2  ;;  %v208_v41 = vsub.f32 %v199_v17, %v204_v36 }
 0x111   : > { %v272_v24 = vmul.f32 0.125, %v267_v23 }
 0x112   : > { %v210_v44 = vmul.f32 1.442695, %v208_v41 }
 0x113   : > { %v274_v25 = vsel %vm519_vm3, %v272_v24, -3.4028235e+38 }
 0x114   : > { %v276_v26 = vsel %vm201_vm2, %v274_v25, -inf }
 0x115   : > { %277 = vmax.xlane.f32.xlu1 %v276_v26 }
 0x117   : > { %v207_v45 = vpop.xlane.xlu2 %206 }
 0x118   : > { %v269_v27 = vpop.f32.mrf.mxu2  ;;  %v209_v47 = vsub.f32 %v200_v21, %v207_v45 }
 0x119   : > { %v273_v28 = vmul.f32 0.125, %v269_v27 }
 0x11a   : > { %v212_v49 = vmul.f32 1.442695, %v209_v47 }
 0x11b   : > { %v275_v29 = vsel %vm519_vm3, %v273_v28, -3.4028235e+38 }
 0x11c   : > { %v279_v30 = vsel %vm201_vm2, %v275_v29, -inf }
 0x11d   : > { %280 = vmax.xlane.f32.xlu1 %v279_v30 }
 0x11f   : > { %v300_v54 = vpop.permute.xlu2 %299 }
 0x120   : > { %312 = vmatpush.bf16.msra.mxu3 %v300_v54 }
 0x188   : > { %v278_v31 = vpop.xlane.xlu1 %277 }
 0x189   : > { %v282_v32 = vsub.f32 %v274_v25, %v278_v31 }
 0x18b   : > { %v284_v33 = vmul.f32 1.442695, %v282_v32 }
 0x18d   : > { %448 = vpow2.f32 %v284_v33 }
 0x190   : > { %v281_v38 = vpop.xlane.xlu1 %280 }
 0x191   : > { %v283_v39 = vsub.f32 %v275_v29, %v281_v38 }
 0x193   : > { %v449_v40 = vpop.eup %448  ;;  %v286_v42 = vmul.f32 1.442695, %v283_v39 }
 0x194   : > { %v288_v43 = vsel %vm201_vm2, %v449_v40, 0.0 }
 0x195   : > { %450 = vpow2.f32 %v286_v42  ;;  %289 = vadd.xlane.f32.xlu0 %v288_v43 }
 0x196   : > { %452 = vpow2.f32 %v210_v44 }
 0x197   : > { %454 = vpow2.f32 %v212_v49 }
 0x19b   : > { %v451_v46 = vpop.eup %450 }
 0x19c   : > { %v291_v48 = vsel %vm201_vm2, %v451_v46, 0.0  ;;  %v453_v50 = vpop.eup %452 }
 0x19d   : > { %292 = vadd.xlane.f32.xlu1 %v291_v48  ;;  %v214_v51 = vsel %vm201_vm2, %v453_v50, 0.0  ;;  %v455_v52 = vpop.eup %454 }
 0x19e   : > { %v217_v53 = vsel %vm201_vm2, %v455_v52, 0.0 }
 0x1a5   : > { %215 = vadd.xlane.f32.xlu1 %v214_v51 }
 0x1ad   : > { %218 = vadd.xlane.f32.xlu1 %v217_v53 }
 0x208   : > { %v290_v55 = vpop.xlane.xlu0 %289 }
 0x209   : > { %456 = vrcp.f32 %v290_v55 }
 0x20f   : > { %v457_v57 = vpop.eup %456 }
 0x210   : > { %v293_v56 = vpop.xlane.xlu1 %292  ;;  %v296_v60 = vmul.f32 %v457_v57, %v449_v40 }
 0x211   : > { %458 = vrcp.f32 %v293_v56 }
 0x217   : > { %v459_v58 = vpop.eup %458 }
 0x218   : > { %v216_v59 = vpop.xlane.xlu1 %215  ;;  %v297_v61 = vmul.f32 %v459_v58, %v451_v46 }
 0x219   : > { %460 = vrcp.f32 %v216_v59 }
 0x21a   : > { %v298_v62 = vpack.c.bf16 %v297_v61, %v296_v60 }
 0x21c   : > { %420 = vmatmul.msk.bf16.vlgmr.msra.gmra.mxu3 %vm201_vm2, %v298_v62 }
 0x21f   : > { %v461_v0 = vpop.eup %460 }
 0x220   : > { %v219_v63 = vpop.xlane.xlu1 %218  ;;  %v222_v2 = vmul.f32 %v461_v0, %v453_v50 }
 0x221   : > { %462 = vrcp.f32 %v219_v63 }
 0x227   : > { %v463_v1 = vpop.eup %462 }
 0x228   : > { %v223_v3 = vmul.f32 %v463_v1, %v455_v52 }
 0x22a   : > { %v224_v4 = vpack.c.bf16 %v223_v3, %v222_v2 }
 0x22c   : > { %418 = vmatmul.msk.bf16.vlgmr.msra.gmra.mxu1 %vm201_vm2, %v224_v4 }
 0x29f   : > { %v314_v5 = vpop.f32.mrf.mxu3 }
 0x2a7   : > { %v316_v6 = vpop.f32.mrf.mxu3 }
 0x2a8   : > { %v443_v7 = vpack.i.bf16 %v316_v6, %v314_v5 }
 0x2a9   : > { %v243_v8 = vpop.f32.mrf.mxu1 }
 0x2aa   : > { %444 = vrot.lane.b32.xlu1 %v443_v7, %s472_s15 }
 0x2b1   : > { %v245_v12 = vpop.f32.mrf.mxu1 }
 0x31c   : > { %v445_v9 = vpop.permute.xlu1 %444 }
 0x31d   : > { %v447_v10 = vunpack.i.h.bf16 %v445_v9  ;;  %v446_v11 = vunpack.i.l.bf16 %v445_v9 }
 0x31f   : > { %v328_v13 = vsel %vm172_vm0, %v245_v12, %v447_v10  ;;  %v327_v14 = vsel %vm172_vm0, %v243_v8, %v446_v11 }
 0x320   : > { %v430_v15 = vpack.c.bf16 %v328_v13, %v327_v14 }
 0x322   : > { %431 = vst [vmem:[%s157_s22] sm:$0xff] %v430_v15  }
 0x323 PF: > { %s12_s9 = sadd.s32 1, %s470_s9  }
 0x324   : > { %p9_p4 = scmp.ge.s32.totalorder %s12_s9, 4  }
 0x326   :  { %11 = sbr.rel (!%p9_p4) target bundleno = 1 (0x1), region = 61 }

// kernel: deberta_classifier_forward.12
= control target key start
LH: loop header
LB: loop body
LE: loop exit
PB: predicated region body
PF: predicated region fallthrough
CT: control target
= control target key end

     0   :  { %s363_s12 = smov 0   ;;  %s393_s0 = inlined_call_operand.vmem [shape: bf16[32,128], index: 0, kind: input, shape index: {}]   ;;  %s394_s1 = inlined_call_operand.vmem [shape: f32[1,128], index: 1, kind: input, shape index: {}]   ;;  %s395_s2 = inlined_call_operand.vmem [shape: f32[1,128], index: 2, kind: input, shape index: {}]   ;;  %s396_s3 = inlined_call_operand.vmem [shape: bf16[32,128], index: 3, kind: output, shape index: {}]  }
   0x1 LB: > { %s297_s13 = sadd.s32 4294967295, %s340_s12   ;;  %p301_p0 = scmp.ge.s32.totalorder %s340_s12, 1  ;;  %s340_s12 = sphi %s363_s12, %s13_s12  }
   0x2   : > { %p138_p1 = scmp.lt.s32.totalorder %s340_s12, 3 }
   0x4   : > { %p139_p2 = pnand %p301_p0, %p138_p1 }
   0x5   : > { %s302_s14 = sshll.u32 (!%p139_p2), %s297_s13, 1 }
   0x6   : > { %142 = sbr.rel (%p139_p2) target bundleno = 294 (0x126), region = 32  ;;  %p163_p3 = scmp.lt.s32.totalorder (!%p139_p2), %s302_s14, 3 }
   0xb   : > { %s398_s14 = smov (!%p163_p3, %s302_s14), 3  ;;  %v342_v3 = vmov 128.0   ;;  %v326_v36 = vld [vmem:[%s394_s1] ss:$0 sm:$0xff] }
   0xc   : > { %s303_s15 = sshll.u32 %s398_s14, 2  ;;  %328 = vrcp.f32 %v342_v3  ;;  %v327_v40 = vld [vmem:[%s395_s2] ss:$0 sm:$0xff] }
   0xd   : > { %s166_s18 = scalar_lea.vmem %s393_s0, %s303_s15  ;;  %s172_s25 = scalar_lea.vmem %s396_s3, %s303_s15 }
   0xe   : > { %v309_v0 = vld [vmem:[%s166_s18] sm:$0xff]  }
   0xf   : > { %v310_v1 = vunpack.c.l.bf16 %v309_v0  ;;  %v311_v2 = vunpack.c.h.bf16 %v309_v0 }
  0x11   : > { %178 = vadd.xlane.f32.xlu0 %v310_v1 }
  0x12   : > { %v329_v4 = vpop.eup %328 }
  0x13   : > { %v183_v5 = vmul.f32 128.0, %v329_v4  ;;  %vm187_vm0 = vweird.f32 %v329_v4 }
  0x15   : > { %v184_v6 = vsub.f32 1.0, %v183_v5 }
  0x17   : > { %v185_v7 = vmul.f32 %v329_v4, %v184_v6 }
  0x19   : > { %180 = vadd.xlane.f32.xlu0 %v311_v2  ;;  %v186_v8 = vadd.f32 %v329_v4, %v185_v7 }
  0x1b   : > { %v188_v9 = vsel %vm187_vm0, %v329_v4, %v186_v8 }
  0x84   : > { %v179_v10 = vpop.xlane.xlu0 %178 }
  0x85   : > { %v189_v11 = vmul.f32 %v188_v9, %v179_v10 }
  0x87   : > { %v191_v12 = vsub.f32 %v310_v1, %v189_v11 }
  0x89   : > { %v193_v13 = vmul.f32 %v191_v12, %v191_v12 }
  0x8b   : > { %195 = vadd.xlane.f32.xlu1 %v193_v13 }
  0x8c   : > { %v181_v14 = vpop.xlane.xlu0 %180 }
  0x8d   : > { %v190_v15 = vmul.f32 %v188_v9, %v181_v14 }
  0x8f   : > { %v192_v16 = vsub.f32 %v311_v2, %v190_v15 }
  0x91   : > { %v194_v17 = vmul.f32 %v192_v16, %v192_v16 }
  0x93   : > { %197 = vadd.xlane.f32.xlu1 %v194_v17 }
  0xfe   : > { %v196_v18 = vpop.xlane.xlu1 %195 }
  0xff   : > { %v199_v19 = vmul.f32 %v196_v18, %v188_v9 }
 0x101   : > { %v201_v20 = vadd.f32 1e-07, %v199_v19 }
 0x103   : > { %330 = vrsqrt.f32 %v201_v20  ;;  %vm209_vm2 = vweird.f32 %v201_v20 }
 0x106   : > { %v198_v21 = vpop.xlane.xlu1 %197 }
 0x107   : > { %v200_v22 = vmul.f32 %v198_v21, %v188_v9 }
 0x109   : > { %v331_v23 = vpop.eup %330  ;;  %v202_v24 = vadd.f32 1e-07, %v200_v22 }
 0x10a   : > { %v204_v25 = vmul.f32 %v331_v23, %v201_v20  ;;  %vm210_vm1 = vweird.f32 %v331_v23 }
 0x10b   : > { %332 = vrsqrt.f32 %v202_v24  ;;  %vm211_vm3 = vmor %vm209_vm2, %vm210_vm1  ;;  %vm219_vm5 = vweird.f32 %v202_v24 }
 0x10c   : > { %v205_v26 = vmul.f32 %v331_v23, %v204_v25 }
 0x10e   : > { %v206_v27 = vmul.f32 0.5, %v205_v26 }
 0x110   : > { %v207_v28 = vsub.f32 1.5, %v206_v27 }
 0x111   : > { %v333_v29 = vpop.eup %332 }
 0x112   : > { %v208_v30 = vmul.f32 %v331_v23, %v207_v28  ;;  %v214_v31 = vmul.f32 %v333_v29, %v202_v24  ;;  %vm220_vm4 = vweird.f32 %v333_v29 }
 0x113   : > { %vm221_vm6 = vmor %vm219_vm5, %vm220_vm4 }
 0x114   : > { %v215_v32 = vmul.f32 %v333_v29, %v214_v31  ;;  %v212_v33 = vsel %vm211_vm3, %v331_v23, %v208_v30 }
 0x115   : > { %v223_v37 = vmul.f32 %v212_v33, %v191_v12 }
 0x116   : > { %v216_v34 = vmul.f32 0.5, %v215_v32 }
 0x117   : > { %v229_v41 = vmul.f32 %v326_v36, %v223_v37 }
 0x118   : > { %v217_v35 = vsub.f32 1.5, %v216_v34 }
 0x119   : > { %v235_v44 = vadd.f32 %v327_v40, %v229_v41 }
 0x11a   : > { %v218_v38 = vmul.f32 %v333_v29, %v217_v35 }
 0x11c   : > { %v222_v39 = vsel %vm221_vm6, %v333_v29, %v218_v38 }
 0x11d   : > { %v224_v42 = vmul.f32 %v222_v39, %v192_v16 }
 0x11f   : > { %v230_v43 = vmul.f32 %v326_v36, %v224_v42 }
 0x121   : > { %v236_v45 = vadd.f32 %v327_v40, %v230_v43 }
 0x123   : > { %v315_v46 = vpack.c.bf16 %v236_v45, %v235_v44 }
 0x125   : > { %316 = vst [vmem:[%s172_s25] sm:$0xff] %v315_v46  }
 0x126 PF: > { %s13_s12 = sadd.s32 1, %s340_s12  }
 0x127   : > { %p10_p4 = scmp.ge.s32.totalorder %s13_s12, 4  }
 0x129   :  { %12 = sbr.rel (!%p10_p4) target bundleno = 1 (0x1), region = 62 }

// kernel: deberta_classifier_forward.18
= control target key start
LH: loop header
LB: loop body
LE: loop exit
PB: predicated region body
PF: predicated region fallthrough
CT: control target
= control target key end

     0   :  { %8 = vsyncpa [#allocation3], 0  ;;  %s714_s12 = smov 0   ;;  %s745_s0 = inlined_call_operand.vmem [shape: bf16[32,128], index: 0, kind: input, shape index: {}]   ;;  %s746_s1 = inlined_call_operand.hbm [shape: bf16[128,384], index: 1, kind: input, shape index: {}]   ;;  %s747_s2 = inlined_call_operand.vmem [shape: f32[1,384], index: 2, kind: input, shape index: {}]   ;;  %s748_s3 = inlined_call_operand.vmem [shape: bf16[32,384], index: 3, kind: output, shape index: {}]  }
   0x1 LB: > { %s124_s15 = sshll.u32 %s746_s1, 4  ;;  %s489_s16 = sadd.s32 4294967295, %s689_s12   ;;  %s689_s12 = sphi %s714_s12, %s14_s12   ;;  %s125_s15 = int_to_ptr.hbm [resolvable:$true] %s124_s15 }
   0x2   : > { %p491_p0 = scmp.ge.s32.totalorder %s689_s12, 1  ;;  %p113_p1 = scmp.lt.s32.totalorder %s689_s12, 3 }
   0x3   : > { %p636_p2 = scmp.eq.s32.totalorder %s489_s16, 0  ;;  %s691_s17 = smov [#allocation2]  }
   0x4   : > { %p114_p3 = pnand %p491_p0, %p113_p1  ;;  %s126_s18 = sshll.u32 %s691_s17, 4  ;;  %s127_s18 = int_to_ptr.vmem [resolvable:$true] %s126_s18 }
   0x5   : > { %s692_s19 = smov 192   ;;  %s693_s20 = smov 12  }
   0x6   : > { %p632_p4 = pneg %p114_p3  ;;  %154 = sbr.rel (%p114_p3) target bundleno = 193 (0xc1), region = 32 }
   0x8   : > { %p633_p5 = pnand %p636_p2, %p632_p4 }
   0xa   : > { %635 = dma.hbm_to_vmem [thread:$0]  (!%p633_p5), %s125_s15, 3072, %s127_s18, [#allocation3], %s692_s19, %s692_s19, %s693_s20  }
   0xb   : > { %684 = dma.done.wait (%p636_p2), [#allocation3], 3072  }
   0xc   : > { %686 = vsyncadd (%p636_p2), [#allocation3], 4294964224  ;;  %v590_v0 = vld [vmem:[#allocation2 + $0xa8] sm:$0xf]  ;;  %v625_v1 = vld [vmem:[#allocation2 + $0xb0] sm:$0xf0] }
   0xd   : > { %v624_v2 = vld [vmem:[#allocation2 + $0xac] sm:$0xf]  ;;  %v591_v3 = vor.u32 %v625_v1, %v590_v0  ;;  %v592_v4 = vld [vmem:[#allocation2 + $0xb4] sm:$0xf0]  ;;  %v598_v5 = vld [vmem:[#allocation2 + $0xb0] sm:$0xf] }
   0xe   : > { %v626_v6 = vld [vmem:[#allocation2 + $0xb8] sm:$0xf0]  ;;  %v595_v7 = vor.u32 %v624_v2, %v592_v4  ;;  %v578_v9 = vld [vmem:[#allocation2 + $0x90] sm:$0xf]  ;;  %v621_v11 = vld [vmem:[#allocation2 + $0x94] sm:$0xf] }
   0xf   : > { %v599_v8 = vor.u32 %v626_v6, %v598_v5  ;;  %v622_v10 = vld [vmem:[#allocation2 + $0x98] sm:$0xf0]  ;;  %369 = vmatpush.bf16.msra.mxu0 %v591_v3  ;;  %v580_v13 = vld [vmem:[#allocation2 + $0x9c] sm:$0xf0]  ;;  %v586_v14 = vld [vmem:[#allocation2 + $0x98] sm:$0xf] }
  0x10   : > { %v579_v12 = vor.u32 %v622_v10, %v578_v9  ;;  %v623_v15 = vld [vmem:[#allocation2 + $0xa0] sm:$0xf0]  ;;  %383 = vmatpush.bf16.msra.mxu1 %v595_v7  ;;  %v583_v16 = vor.u32 %v621_v11, %v580_v13  ;;  %v566_v18 = vld [vmem:[#allocation2 + $0x78] sm:$0xf]  ;;  %v618_v20 = vld [vmem:[#allocation2 + $0x7c] sm:$0xf] }
  0x11   : > { %397 = vmatpush.bf16.msra.mxu2 %v599_v8  ;;  %v587_v17 = vor.u32 %v623_v15, %v586_v14  ;;  %v619_v19 = vld [vmem:[#allocation2 + $0x80] sm:$0xf0]  ;;  %v568_v21 = vld [vmem:[#allocation2 + $0x84] sm:$0xf0]  ;;  %v574_v22 = vld [vmem:[#allocation2 + $0x80] sm:$0xf] }
  0x12   : > { %v620_v23 = vld [vmem:[#allocation2 + $0x88] sm:$0xf0]  ;;  %v567_v24 = vor.u32 %v619_v19, %v566_v18  ;;  %v571_v25 = vor.u32 %v618_v20, %v568_v21  ;;  %v554_v27 = vld [vmem:[#allocation2 + $0x60] sm:$0xf]  ;;  %v615_v29 = vld [vmem:[#allocation2 + $0x64] sm:$0xf] }
  0x13   : > { %370 = vmatpush.bf16.msra.mxu0 %v579_v12  ;;  %v575_v26 = vor.u32 %v620_v23, %v574_v22  ;;  %v616_v28 = vld [vmem:[#allocation2 + $0x68] sm:$0xf0]  ;;  %v556_v30 = vld [vmem:[#allocation2 + $0x6c] sm:$0xf0]  ;;  %v562_v31 = vld [vmem:[#allocation2 + $0x68] sm:$0xf] }
  0x14   : > { %384 = vmatpush.bf16.msra.mxu1 %v583_v16  ;;  %v617_v32 = vld [vmem:[#allocation2 + $0x70] sm:$0xf0]  ;;  %v555_v33 = vor.u32 %v616_v28, %v554_v27  ;;  %s496_s21 = sshll.u32 %s489_s16, 1  ;;  %v559_v34 = vor.u32 %v615_v29, %v556_v30  ;;  %v542_v36 = vld [vmem:[#allocation2 + $0x48] sm:$0xf] }
  0x15   : > { %398 = vmatpush.bf16.msra.mxu2 %v587_v17  ;;  %v563_v35 = vor.u32 %v617_v32, %v562_v31  ;;  %v613_v37 = vld [vmem:[#allocation2 + $0x50] sm:$0xf0]  ;;  %v612_v38 = vld [vmem:[#allocation2 + $0x4c] sm:$0xf]  ;;  %v544_v39 = vld [vmem:[#allocation2 + $0x54] sm:$0xf0] }
  0x16   : > { %v550_v40 = vld [vmem:[#allocation2 + $0x50] sm:$0xf]  ;;  %v614_v41 = vld [vmem:[#allocation2 + $0x58] sm:$0xf0]  ;;  %v543_v42 = vor.u32 %v613_v37, %v542_v36  ;;  %p181_p6 = scmp.lt.s32.totalorder %s496_s21, 3  ;;  %v547_v43 = vor.u32 %v612_v38, %v544_v39 }
  0x17   : > { %371 = vmatpush.bf16.msra.mxu0 %v567_v24  ;;  %v551_v44 = vor.u32 %v614_v41, %v550_v40  ;;  %v530_v45 = vld [vmem:[#allocation2 + $0x30] sm:$0xf]  ;;  %v610_v46 = vld [vmem:[#allocation2 + $0x38] sm:$0xf0]  ;;  %v609_v47 = vld [vmem:[#allocation2 + $0x34] sm:$0xf] }
  0x18   : > { %385 = vmatpush.bf16.msra.mxu1 %v571_v25  ;;  %v532_v48 = vld [vmem:[#allocation2 + $0x3c] sm:$0xf0]  ;;  %v538_v49 = vld [vmem:[#allocation2 + $0x38] sm:$0xf]  ;;  %v611_v50 = vld [vmem:[#allocation2 + $0x40] sm:$0xf0]  ;;  %v531_v51 = vor.u32 %v610_v46, %v530_v45 }
  0x19   : > { %399 = vmatpush.bf16.msra.mxu2 %v575_v26  ;;  %s750_s21 = smov (!%p181_p6, %s496_s21), 3  ;;  %v535_v52 = vor.u32 %v609_v47, %v532_v48  ;;  %v539_v53 = vor.u32 %v611_v50, %v538_v49  ;;  %v518_v54 = vld [vmem:[#allocation2 + $0x18] sm:$0xf]  ;;  %v607_v55 = vld [vmem:[#allocation2 + $0x20] sm:$0xf0] }
  0x1a   : > { %v606_v56 = vld [vmem:[#allocation2 + $0x1c] sm:$0xf]  ;;  %v520_v57 = vld [vmem:[#allocation2 + $0x24] sm:$0xf0]  ;;  %v526_v58 = vld [vmem:[#allocation2 + $0x20] sm:$0xf]  ;;  %v519_v60 = vor.u32 %v607_v55, %v518_v54 }
  0x1b   : > { %372 = vmatpush.bf16.msra.mxu0 %v555_v33  ;;  %v608_v59 = vld [vmem:[#allocation2 + $0x28] sm:$0xf0]  ;;  %s497_s22 = sshll.u32 %s750_s21, 2  ;;  %v523_v61 = vor.u32 %v606_v56, %v520_v57  ;;  %v506_v63 = vld [vmem:[#allocation2] sm:$0xf]  ;;  %s627_s28 = smul.u32 12, %s750_s21 }
  0x1c   : > { %386 = vmatpush.bf16.msra.mxu1 %v559_v34  ;;  %v527_v62 = vor.u32 %v608_v59, %v526_v58  ;;  %v604_v0 = vld [vmem:[#allocation2 + $0x8] sm:$0xf0]  ;;  %v603_v1 = vld [vmem:[#allocation2 + $0x4] sm:$0xf]  ;;  %v508_v2 = vld [vmem:[#allocation2 + $0xc] sm:$0xf0]  ;;  %s184_s25 = scalar_lea.vmem %s745_s0, %s497_s22 }
  0x1d   : > { %400 = vmatpush.bf16.msra.mxu2 %v563_v35  ;;  %v514_v3 = vld [vmem:[#allocation2 + $0x8] sm:$0xf]  ;;  %v605_v4 = vld [vmem:[#allocation2 + $0x10] sm:$0xf0]  ;;  %v507_v5 = vor.u32 %v604_v0, %v506_v63  ;;  %v511_v6 = vor.u32 %v603_v1, %v508_v2  ;;  %v602_v8 = vld [vmem:[%s184_s25] sm:$0xff]  ;;  %s191_s4 = scalar_lea.vmem %s748_s3, %s627_s28 }
  0x1e   : > { %v515_v7 = vor.u32 %v605_v4, %v514_v3  ;;  %v227_v9 = vld [vmem:[%s747_s2] sm:$0x7] }
  0x1f   : > { %373 = vmatpush.bf16.msra.mxu0 %v543_v42  ;;  %v229_v10 = vperm.slane %v227_v9, 0  ;;  %v230_v11 = vperm.slane %v227_v9, 1  ;;  %v231_v17 = vperm.slane %v227_v9, 2 }
  0x20   : > { %387 = vmatpush.bf16.msra.mxu1 %v547_v43 }
  0x21   : > { %401 = vmatpush.bf16.msra.mxu2 %v551_v44 }
  0x23   : > { %374 = vmatpush.bf16.msra.mxu0 %v531_v51 }
  0x24   : > { %388 = vmatpush.bf16.msra.mxu1 %v535_v52 }
  0x25   : > { %402 = vmatpush.bf16.msra.mxu2 %v539_v53 }
  0x27   : > { %375 = vmatpush.bf16.msra.mxu0 %v519_v60 }
  0x28   : > { %389 = vmatpush.bf16.msra.mxu1 %v523_v61 }
  0x29   : > { %403 = vmatpush.bf16.msra.mxu2 %v527_v62 }
  0x2b   : > { %376 = vmatpush.bf16.msra.mxu0 %v507_v5 }
  0x2c   : > { %390 = vmatpush.bf16.msra.mxu1 %v511_v6 }
  0x2d   : > { %404 = vmatpush.bf16.msra.mxu2 %v515_v7 }
  0x2e   : > { %377 = vmatmul.bf16.vlgmr.msra.gmra.mxu0 %v602_v8 }
  0x2f   : > { %391 = vmatmul.bf16.vlgmr.msra.gmra.mxu1 %v602_v8 }
  0x30   : > { %405 = vmatmul.bf16.vlgmr.msra.gmra.mxu2 %v602_v8 }
  0xab   : > { %v378_v12 = vpop.f32.mrf.mxu0 }
  0xac   : > { %v379_v13 = vadd.f32 %v378_v12, %v229_v10  ;;  %v392_v14 = vpop.f32.mrf.mxu1 }
  0xad   : > { %v393_v15 = vadd.f32 %v392_v14, %v230_v11 }
  0xaf   : > { %v411_v16 = vpack.c.bf16 %v393_v15, %v379_v13 }
  0xb1   : > { %415 = vst [vmem:[%s191_s4] sm:$0xff] %v411_v16 }
  0xb3   : > { %v406_v18 = vpop.f32.mrf.mxu2  ;;  %v380_v20 = vpop.f32.mrf.mxu0 }
  0xb4   : > { %v407_v19 = vadd.f32 %v406_v18, %v231_v17  ;;  %v381_v21 = vadd.f32 %v380_v20, %v229_v10  ;;  %v394_v22 = vpop.f32.mrf.mxu1 }
  0xb5   : > { %v395_v24 = vadd.f32 %v394_v22, %v230_v11 }
  0xb6   : > { %v412_v23 = vpack.c.bf16 %v407_v19, %v407_v19 }
  0xb7   : > { %v413_v25 = vpack.c.bf16 %v395_v24, %v381_v21 }
  0xb8   : > { %416 = vst [vmem:[%s191_s4 + $0x8] sm:$0xf] %v412_v23 }
  0xb9   : > { %417 = vst [vmem:[%s191_s4 + $0xc] sm:$0xff] %v413_v25 }
  0xbb   : > { %v408_v26 = vpop.f32.mrf.mxu2 }
  0xbc   : > { %v409_v27 = vadd.f32 %v408_v26, %v231_v17 }
  0xbe   : > { %v414_v28 = vpack.c.bf16 %v409_v27, %v409_v27 }
  0xc0   : > { %418 = vst [vmem:[%s191_s4 + $0x14] sm:$0xf] %v414_v28 }
  0xc1 PF: > { %s14_s12 = sadd.s32 1, %s689_s12  }
  0xc2   : > { %p11_p7 = scmp.ge.s32.totalorder %s14_s12, 4  }
  0xc4   :  { %13 = sbr.rel (!%p11_p7) target bundleno = 1 (0x1), region = 67 }
  0xc9   :  { %443 = vsyncpa [#allocation3], 1 }
  0xca   :  { %445 = vsyncpa [#allocation3 + $0x1], 1 }

// kernel: deberta_classifier_forward.17
= control target key start
LH: loop header
LB: loop body
LE: loop exit
PB: predicated region body
PF: predicated region fallthrough
CT: control target
= control target key end

     0   :  { %11 = vsyncpa [#allocation3], 0  ;;  %s846_s21 = smov 0   ;;  %s886_s0 = inlined_call_operand.vmem [shape: bf16[32,256], index: 0, kind: input, shape index: {}]   ;;  %s887_s1 = inlined_call_operand.hbm [shape: bf16[256,128], index: 1, kind: input, shape index: {}]   ;;  %s888_s2 = inlined_call_operand.vmem [shape: f32[1,128], index: 2, kind: input, shape index: {}]   ;;  %s889_s3 = inlined_call_operand.vmem [shape: bf16[32,128], index: 3, kind: input, shape index: {}]   ;;  %s890_s4 = inlined_call_operand.vmem [shape: f32[1,128], index: 4, kind: input, shape index: {}]   ;;  %s891_s5 = inlined_call_operand.vmem [shape: f32[1,128], index: 5, kind: input, shape index: {}]   ;;  %s892_s6 = inlined_call_operand.vmem [shape: bf16[32,128], index: 6, kind: output, shape index: {}]  }
   0x1 LB: > { %s195_s24 = sshll.u32 %s887_s1, 4  ;;  %s618_s25 = sadd.s32 4294967295, %s805_s21   ;;  %s805_s21 = sphi %s846_s21, %s17_s21   ;;  %s196_s24 = int_to_ptr.hbm [resolvable:$true] %s195_s24 }
   0x2   : > { %p620_p0 = scmp.ge.s32.totalorder %s805_s21, 1  ;;  %p184_p1 = scmp.lt.s32.totalorder %s805_s21, 3 }
   0x3   : > { %p742_p2 = scmp.eq.s32.totalorder %s618_s25, 0  ;;  %s807_s26 = smov [#allocation2]  }
   0x4   : > { %p185_p3 = pnand %p620_p0, %p184_p1  ;;  %s197_s27 = sshll.u32 %s807_s26, 4  ;;  %s198_s27 = int_to_ptr.vmem [resolvable:$true] %s197_s27 }
   0x5   : > { %s808_s28 = smov 64   ;;  %s809_s29 = smov 4  }
   0x6   : > { %p738_p4 = pneg %p185_p3  ;;  %241 = sbr.rel (%p185_p3) target bundleno = 453 (0x1c5), region = 44 }
   0x8   : > { %p739_p5 = pnand %p742_p2, %p738_p4 }
   0xa   : > { %741 = dma.hbm_to_vmem [thread:$0]  (!%p739_p5), %s196_s24, 2048, %s198_s27, [#allocation3], %s808_s28, %s808_s28, %s809_s29  }
   0xb   : > { %800 = dma.done.wait (%p742_p2), [#allocation3], 2048  }
   0xc   : > { %802 = vsyncadd (%p742_p2), [#allocation3], 4294965248  ;;  %v716_v0 = vld [vmem:[#allocation2 + $0x38] sm:$0xff]  ;;  %v715_v2 = vld [vmem:[#allocation2 + $0x30] sm:$0xff]  ;;  %s625_s30 = sshll.u32 %s618_s25, 1  ;;  %v810_v36 = vmov 128.0  }
   0xd   : > { %v724_v1 = vld [vmem:[#allocation2 + $0x78] sm:$0xff]  ;;  %441 = vmatpush.bf16.msra.mxu0 %v716_v0  ;;  %v723_v3 = vld [vmem:[#allocation2 + $0x70] sm:$0xff]  ;;  %v714_v4 = vld [vmem:[#allocation2 + $0x28] sm:$0xff]  ;;  %p279_p6 = scmp.lt.s32.totalorder %s625_s30, 3  ;;  %759 = vrcp.f32 %v810_v36 }
   0xe   : > { %455 = vmatpush.bf16.msra.mxu1 %v724_v1  ;;  %v722_v5 = vld [vmem:[#allocation2 + $0x68] sm:$0xff]  ;;  %v713_v6 = vld [vmem:[#allocation2 + $0x20] sm:$0xff]  ;;  %v712_v8 = vld [vmem:[#allocation2 + $0x18] sm:$0xff] }
   0xf   : > { %v721_v7 = vld [vmem:[#allocation2 + $0x60] sm:$0xff]  ;;  %v720_v9 = vld [vmem:[#allocation2 + $0x58] sm:$0xff]  ;;  %s894_s30 = smov (!%p279_p6, %s625_s30), 3  ;;  %v711_v10 = vld [vmem:[#allocation2 + $0x10] sm:$0xff] }
  0x10   : > { %v719_v11 = vld [vmem:[#allocation2 + $0x50] sm:$0xff]  ;;  %s706_s7 = sshll.u32 %s894_s30, 3  ;;  %v710_v12 = vld [vmem:[#allocation2 + $0x8] sm:$0xff]  ;;  %v709_v14 = vld [vmem:[#allocation2] sm:$0xff]  ;;  %s629_s11 = sshll.u32 %s894_s30, 2 }
  0x11   : > { %442 = vmatpush.bf16.msra.mxu0 %v715_v2  ;;  %v718_v13 = vld [vmem:[#allocation2 + $0x48] sm:$0xff]  ;;  %s283_s10 = scalar_lea.vmem %s886_s0, %s706_s7  ;;  %v717_v15 = vld [vmem:[#allocation2 + $0x40] sm:$0xff]  ;;  %s289_s14 = scalar_lea.vmem %s889_s3, %s629_s11 }
  0x12   : > { %456 = vmatpush.bf16.msra.mxu1 %v723_v3  ;;  %v634_v16 = vld [vmem:[%s283_s10] sm:$0xf]  ;;  %v708_v17 = vld [vmem:[%s283_s10 + $0x4] sm:$0xf0]  ;;  %v707_v18 = vld [vmem:[%s283_s10 + $0x4] sm:$0xf]  ;;  %s295_s24 = scalar_lea.vmem %s892_s6, %s629_s11 }
  0x13   : > { %v636_v19 = vld [vmem:[%s283_s10 + $0x8] sm:$0xf0]  ;;  %v635_v20 = vor.u32 %v708_v17, %v634_v16  ;;  %v756_v22 = vld [vmem:[%s888_s2] ss:$0 sm:$0xff]  ;;  %v760_v37 = vpop.eup %759 }
  0x14   : > { %v639_v21 = vor.u32 %v707_v18, %v636_v19  ;;  %v726_v23 = vld [vmem:[%s289_s14] sm:$0xff]   ;;  %v480_v38 = vmul.f32 128.0, %v760_v37  ;;  %vm484_vm0 = vweird.f32 %v760_v37 }
  0x15   : > { %443 = vmatpush.bf16.msra.mxu0 %v714_v4  ;;  %v727_v27 = vunpack.c.l.bf16 %v726_v23  ;;  %v728_v32 = vunpack.c.h.bf16 %v726_v23 }
  0x16   : > { %457 = vmatpush.bf16.msra.mxu1 %v722_v5  ;;  %v481_v39 = vsub.f32 1.0, %v480_v38  ;;  %v757_v5 = vld [vmem:[%s890_s4] ss:$0 sm:$0xff] }
  0x18   : > { %v482_v40 = vmul.f32 %v760_v37, %v481_v39 }
  0x19   : > { %444 = vmatpush.bf16.msra.mxu0 %v713_v6 }
  0x1a   : > { %458 = vmatpush.bf16.msra.mxu1 %v721_v7  ;;  %v483_v41 = vadd.f32 %v760_v37, %v482_v40 }
  0x1c   : > { %v485_v42 = vsel %vm484_vm0, %v760_v37, %v483_v41 }
  0x1d   : > { %445 = vmatpush.bf16.msra.mxu0 %v712_v8 }
  0x1e   : > { %459 = vmatpush.bf16.msra.mxu1 %v720_v9  ;;  %v758_v9 = vld [vmem:[%s891_s5] ss:$0 sm:$0xff] }
  0x21   : > { %446 = vmatpush.bf16.msra.mxu0 %v711_v10 }
  0x22   : > { %460 = vmatpush.bf16.msra.mxu1 %v719_v11 }
  0x25   : > { %447 = vmatpush.bf16.msra.mxu0 %v710_v12 }
  0x26   : > { %461 = vmatpush.bf16.msra.mxu1 %v718_v13 }
  0x29   : > { %448 = vmatpush.bf16.msra.mxu0 %v709_v14 }
  0x2a   : > { %462 = vmatpush.bf16.msra.mxu1 %v717_v15 }
  0x2c   : > { %449 = vmatmul.bf16.vlgmr.msra.gmra.mxu0 %v635_v20 }
  0x2d   : > { %463 = vmatmul.bf16.vlgmr.msra.gmra.mxu1 %v639_v21 }
  0xa9   : > { %v450_v24 = vpop.f32.mrf.mxu0 }
  0xaa   : > { %v464_v25 = vpop.f32.mrf.mxu1  ;;  %v451_v26 = vadd.f32 %v756_v22, %v450_v24 }
  0xac   : > { %v465_v28 = vadd.f32 %v464_v25, %v451_v26 }
  0xae   : > { %v473_v29 = vadd.f32 %v727_v27, %v465_v28 }
  0xb0   : > { %475 = vadd.xlane.f32.xlu0 %v473_v29 }
  0xb1   : > { %v452_v30 = vpop.f32.mrf.mxu0 }
  0xb2   : > { %v453_v31 = vadd.f32 %v756_v22, %v452_v30  ;;  %v466_v33 = vpop.f32.mrf.mxu1 }
  0xb4   : > { %v467_v34 = vadd.f32 %v466_v33, %v453_v31 }
  0xb6   : > { %v474_v35 = vadd.f32 %v728_v32, %v467_v34 }
  0xb8   : > { %477 = vadd.xlane.f32.xlu0 %v474_v35 }
 0x123   : > { %v476_v43 = vpop.xlane.xlu0 %475 }
 0x124   : > { %v486_v44 = vmul.f32 %v485_v42, %v476_v43 }
 0x126   : > { %v488_v45 = vsub.f32 %v473_v29, %v486_v44 }
 0x128   : > { %v490_v46 = vmul.f32 %v488_v45, %v488_v45 }
 0x12a   : > { %492 = vadd.xlane.f32.xlu1 %v490_v46 }
 0x12b   : > { %v478_v47 = vpop.xlane.xlu0 %477 }
 0x12c   : > { %v487_v48 = vmul.f32 %v485_v42, %v478_v47 }
 0x12e   : > { %v489_v49 = vsub.f32 %v474_v35, %v487_v48 }
 0x130   : > { %v491_v50 = vmul.f32 %v489_v49, %v489_v49 }
 0x132   : > { %494 = vadd.xlane.f32.xlu1 %v491_v50 }
 0x19d   : > { %v493_v51 = vpop.xlane.xlu1 %492 }
 0x19e   : > { %v496_v52 = vmul.f32 %v493_v51, %v485_v42 }
 0x1a0   : > { %v498_v53 = vadd.f32 1e-07, %v496_v52 }
 0x1a2   : > { %761 = vrsqrt.f32 %v498_v53  ;;  %vm506_vm2 = vweird.f32 %v498_v53 }
 0x1a5   : > { %v495_v54 = vpop.xlane.xlu1 %494 }
 0x1a6   : > { %v497_v55 = vmul.f32 %v495_v54, %v485_v42 }
 0x1a8   : > { %v762_v56 = vpop.eup %761  ;;  %v499_v57 = vadd.f32 1e-07, %v497_v55 }
 0x1a9   : > { %v501_v58 = vmul.f32 %v762_v56, %v498_v53  ;;  %vm507_vm1 = vweird.f32 %v762_v56 }
 0x1aa   : > { %763 = vrsqrt.f32 %v499_v57  ;;  %vm508_vm3 = vmor %vm506_vm2, %vm507_vm1  ;;  %vm516_vm5 = vweird.f32 %v499_v57 }
 0x1ab   : > { %v502_v59 = vmul.f32 %v762_v56, %v501_v58 }
 0x1ad   : > { %v503_v60 = vmul.f32 0.5, %v502_v59 }
 0x1af   : > { %v504_v61 = vsub.f32 1.5, %v503_v60 }
 0x1b0   : > { %v764_v62 = vpop.eup %763 }
 0x1b1   : > { %v505_v63 = vmul.f32 %v762_v56, %v504_v61  ;;  %v511_v0 = vmul.f32 %v764_v62, %v499_v57  ;;  %vm517_vm4 = vweird.f32 %v764_v62 }
 0x1b2   : > { %vm518_vm6 = vmor %vm516_vm5, %vm517_vm4 }
 0x1b3   : > { %v512_v1 = vmul.f32 %v764_v62, %v511_v0  ;;  %v509_v2 = vsel %vm508_vm3, %v762_v56, %v505_v63 }
 0x1b4   : > { %v520_v6 = vmul.f32 %v509_v2, %v488_v45 }
 0x1b5   : > { %v513_v3 = vmul.f32 0.5, %v512_v1 }
 0x1b6   : > { %v526_v10 = vmul.f32 %v757_v5, %v520_v6 }
 0x1b7   : > { %v514_v4 = vsub.f32 1.5, %v513_v3 }
 0x1b8   : > { %v532_v13 = vadd.f32 %v758_v9, %v526_v10 }
 0x1b9   : > { %v515_v7 = vmul.f32 %v764_v62, %v514_v4 }
 0x1bb   : > { %v519_v8 = vsel %vm518_vm6, %v764_v62, %v515_v7 }
 0x1bc   : > { %v521_v11 = vmul.f32 %v519_v8, %v489_v49 }
 0x1be   : > { %v527_v12 = vmul.f32 %v757_v5, %v521_v11 }
 0x1c0   : > { %v533_v14 = vadd.f32 %v758_v9, %v527_v12 }
 0x1c2   : > { %v732_v15 = vpack.c.bf16 %v533_v14, %v532_v13 }
 0x1c4   : > { %733 = vst [vmem:[%s295_s24] sm:$0xff] %v732_v15  }
 0x1c5 PF: > { %s17_s21 = sadd.s32 1, %s805_s21  }
 0x1c6   : > { %p14_p7 = scmp.ge.s32.totalorder %s17_s21, 4  }
 0x1c8   :  { %16 = sbr.rel (!%p14_p7) target bundleno = 1 (0x1), region = 82 }
 0x1cd   :  { %560 = vsyncpa [#allocation3], 1 }
 0x1ce   :  { %562 = vsyncpa [#allocation3 + $0x1], 1 }

// kernel: deberta_classifier_forward.16
= control target key start
LH: loop header
LB: loop body
LE: loop exit
PB: predicated region body
PF: predicated region fallthrough
CT: control target
= control target key end

     0   :  { %8 = vsyncpa [#allocation3], 0  ;;  %s635_s12 = smov 0   ;;  %s666_s0 = inlined_call_operand.vmem [shape: bf16[32,128], index: 0, kind: input, shape index: {}]   ;;  %s667_s1 = inlined_call_operand.hbm [shape: bf16[128,256], index: 1, kind: input, shape index: {}]   ;;  %s668_s2 = inlined_call_operand.vmem [shape: f32[1,256], index: 2, kind: input, shape index: {}]   ;;  %s669_s3 = inlined_call_operand.vmem [shape: bf16[32,256], index: 3, kind: output, shape index: {}]  }
   0x1 LB: > { %s124_s15 = sshll.u32 %s667_s1, 4  ;;  %s441_s16 = sadd.s32 4294967295, %s610_s12   ;;  %s610_s12 = sphi %s635_s12, %s14_s12   ;;  %s125_s15 = int_to_ptr.hbm [resolvable:$true] %s124_s15 }
   0x2   : > { %p443_p0 = scmp.ge.s32.totalorder %s610_s12, 1  ;;  %p113_p1 = scmp.lt.s32.totalorder %s610_s12, 3 }
   0x3   : > { %p549_p2 = scmp.eq.s32.totalorder %s441_s16, 0  ;;  %s612_s17 = smov [#allocation2]  }
   0x4   : > { %p114_p3 = pnand %p443_p0, %p113_p1  ;;  %s126_s18 = sshll.u32 %s612_s17, 4  ;;  %s127_s18 = int_to_ptr.vmem [resolvable:$true] %s126_s18 }
   0x5   : > { %s613_s19 = smov 128   ;;  %s614_s20 = smov 8  }
   0x6   : > { %p545_p4 = pneg %p114_p3  ;;  %154 = sbr.rel (%p114_p3) target bundleno = 209 (0xd1), region = 32 }
   0x8   : > { %p546_p5 = pnand %p549_p2, %p545_p4 }
   0xa   : > { %548 = dma.hbm_to_vmem [thread:$0]  (!%p546_p5), %s125_s15, 2048, %s127_s18, [#allocation3], %s613_s19, %s613_s19, %s614_s20  }
   0xb   : > { %605 = dma.done.wait (%p549_p2), [#allocation3], 2048  }
   0xc   : > { %607 = vsyncadd (%p549_p2), [#allocation3], 4294965248  ;;  %v515_v0 = vld [vmem:[#allocation2 + $0x70] sm:$0xf]  ;;  %v540_v1 = vld [vmem:[#allocation2 + $0x74] sm:$0xf0] }
   0xd   : > { %v539_v2 = vld [vmem:[#allocation2 + $0x74] sm:$0xf]  ;;  %v516_v3 = vor.u32 %v540_v1, %v515_v0  ;;  %v517_v4 = vld [vmem:[#allocation2 + $0x78] sm:$0xf0]  ;;  %v507_v5 = vld [vmem:[#allocation2 + $0x60] sm:$0xf] }
   0xe   : > { %v538_v6 = vld [vmem:[#allocation2 + $0x64] sm:$0xf0]  ;;  %v520_v7 = vor.u32 %v539_v2, %v517_v4  ;;  %v537_v8 = vld [vmem:[#allocation2 + $0x64] sm:$0xf]  ;;  %v509_v9 = vld [vmem:[#allocation2 + $0x68] sm:$0xf0] }
   0xf   : > { %303 = vmatpush.bf16.msra.mxu0 %v516_v3  ;;  %v508_v10 = vor.u32 %v538_v6, %v507_v5  ;;  %v512_v11 = vor.u32 %v537_v8, %v509_v9  ;;  %v499_v12 = vld [vmem:[#allocation2 + $0x50] sm:$0xf]  ;;  %v536_v13 = vld [vmem:[#allocation2 + $0x54] sm:$0xf0]  ;;  %v535_v14 = vld [vmem:[#allocation2 + $0x54] sm:$0xf] }
  0x10   : > { %317 = vmatpush.bf16.msra.mxu1 %v520_v7  ;;  %v501_v15 = vld [vmem:[#allocation2 + $0x58] sm:$0xf0]  ;;  %v500_v16 = vor.u32 %v536_v13, %v499_v12  ;;  %v491_v18 = vld [vmem:[#allocation2 + $0x40] sm:$0xf]  ;;  %v534_v19 = vld [vmem:[#allocation2 + $0x44] sm:$0xf0] }
  0x11   : > { %v504_v17 = vor.u32 %v535_v14, %v501_v15  ;;  %v533_v20 = vld [vmem:[#allocation2 + $0x44] sm:$0xf]  ;;  %v493_v21 = vld [vmem:[#allocation2 + $0x48] sm:$0xf0]  ;;  %v492_v22 = vor.u32 %v534_v19, %v491_v18  ;;  %v483_v24 = vld [vmem:[#allocation2 + $0x30] sm:$0xf] }
  0x12   : > { %v496_v23 = vor.u32 %v533_v20, %v493_v21  ;;  %v532_v25 = vld [vmem:[#allocation2 + $0x34] sm:$0xf0]  ;;  %v531_v26 = vld [vmem:[#allocation2 + $0x34] sm:$0xf]  ;;  %v485_v27 = vld [vmem:[#allocation2 + $0x38] sm:$0xf0] }
  0x13   : > { %304 = vmatpush.bf16.msra.mxu0 %v508_v10  ;;  %s448_s21 = sshll.u32 %s441_s16, 1  ;;  %v484_v28 = vor.u32 %v532_v25, %v483_v24  ;;  %v488_v29 = vor.u32 %v531_v26, %v485_v27  ;;  %v475_v30 = vld [vmem:[#allocation2 + $0x20] sm:$0xf]  ;;  %v530_v31 = vld [vmem:[#allocation2 + $0x24] sm:$0xf0] }
  0x14   : > { %318 = vmatpush.bf16.msra.mxu1 %v512_v11  ;;  %p181_p6 = scmp.lt.s32.totalorder %s448_s21, 3  ;;  %v529_v32 = vld [vmem:[#allocation2 + $0x24] sm:$0xf]  ;;  %v477_v33 = vld [vmem:[#allocation2 + $0x28] sm:$0xf0]  ;;  %v476_v34 = vor.u32 %v530_v31, %v475_v30 }
  0x15   : > { %v480_v35 = vor.u32 %v529_v32, %v477_v33  ;;  %v467_v36 = vld [vmem:[#allocation2 + $0x10] sm:$0xf]  ;;  %v528_v37 = vld [vmem:[#allocation2 + $0x14] sm:$0xf0]  ;;  %v527_v38 = vld [vmem:[#allocation2 + $0x14] sm:$0xf] }
  0x16   : > { %s671_s21 = smov (!%p181_p6, %s448_s21), 3  ;;  %v469_v39 = vld [vmem:[#allocation2 + $0x18] sm:$0xf0]  ;;  %v468_v40 = vor.u32 %v528_v37, %v467_v36  ;;  %v459_v42 = vld [vmem:[#allocation2] sm:$0xf] }
  0x17   : > { %305 = vmatpush.bf16.msra.mxu0 %v500_v16  ;;  %v472_v41 = vor.u32 %v527_v38, %v469_v39  ;;  %v526_v43 = vld [vmem:[#allocation2 + $0x4] sm:$0xf0]  ;;  %s449_s22 = sshll.u32 %s671_s21, 2  ;;  %v525_v44 = vld [vmem:[#allocation2 + $0x4] sm:$0xf]  ;;  %s523_s28 = sshll.u32 %s671_s21, 3 }
  0x18   : > { %319 = vmatpush.bf16.msra.mxu1 %v504_v17  ;;  %v461_v45 = vld [vmem:[#allocation2 + $0x8] sm:$0xf0]  ;;  %v460_v46 = vor.u32 %v526_v43, %v459_v42  ;;  %s184_s25 = scalar_lea.vmem %s666_s0, %s449_s22  ;;  %v211_v49 = vld [vmem:[%s668_s2] sm:$0x3]  ;;  %s191_s4 = scalar_lea.vmem %s669_s3, %s523_s28 }
  0x19   : > { %v464_v47 = vor.u32 %v525_v44, %v461_v45  ;;  %v524_v48 = vld [vmem:[%s184_s25] sm:$0xff]  ;;  %v213_v50 = vperm.slane %v211_v49, 0  ;;  %v214_v51 = vperm.slane %v211_v49, 1 }
  0x1b   : > { %306 = vmatpush.bf16.msra.mxu0 %v492_v22 }
  0x1c   : > { %320 = vmatpush.bf16.msra.mxu1 %v496_v23 }
  0x1f   : > { %307 = vmatpush.bf16.msra.mxu0 %v484_v28 }
  0x20   : > { %321 = vmatpush.bf16.msra.mxu1 %v488_v29 }
  0x23   : > { %308 = vmatpush.bf16.msra.mxu0 %v476_v34 }
  0x24   : > { %322 = vmatpush.bf16.msra.mxu1 %v480_v35 }
  0x27   : > { %309 = vmatpush.bf16.msra.mxu0 %v468_v40 }
  0x28   : > { %323 = vmatpush.bf16.msra.mxu1 %v472_v41 }
  0x2b   : > { %310 = vmatpush.bf16.msra.mxu0 %v460_v46 }
  0x2c   : > { %324 = vmatpush.bf16.msra.mxu1 %v464_v47 }
  0x2e   : > { %311 = vmatmul.bf16.vlgmr.msra.gmra.mxu0 %v524_v48 }
  0x2f   : > { %325 = vmatmul.bf16.vlgmr.msra.gmra.mxu1 %v524_v48 }
  0xab   : > { %v312_v52 = vpop.f32.mrf.mxu0 }
  0xac   : > { %v313_v53 = vadd.f32 %v312_v52, %v213_v50  ;;  %v326_v54 = vpop.f32.mrf.mxu1 }
  0xad   : > { %v327_v55 = vadd.f32 %v326_v54, %v214_v51 }
  0xae   : > { %v331_v56 = vmul.f32 %v313_v53, %v313_v53 }
  0xaf   : > { %v332_v57 = vmul.f32 %v327_v55, %v327_v55 }
  0xb0   : > { %v335_v58 = vmul.f32 %v331_v56, %v313_v53 }
  0xb1   : > { %v336_v59 = vmul.f32 %v332_v57, %v327_v55 }
  0xb2   : > { %v339_v60 = vmul.f32 0.044715, %v335_v58 }
  0xb3   : > { %v340_v61 = vmul.f32 0.044715, %v336_v59  ;;  %v314_v62 = vpop.f32.mrf.mxu0 }
  0xb4   : > { %v343_v63 = vadd.f32 %v339_v60, %v313_v53  ;;  %v315_v0 = vadd.f32 %v314_v62, %v213_v50  ;;  %v328_v1 = vpop.f32.mrf.mxu1 }
  0xb5   : > { %v344_v2 = vadd.f32 %v340_v61, %v327_v55  ;;  %v329_v3 = vadd.f32 %v328_v1, %v214_v51 }
  0xb6   : > { %v347_v4 = vmul.f32 0.7978846, %v343_v63  ;;  %v333_v5 = vmul.f32 %v315_v0, %v315_v0 }
  0xb7   : > { %v348_v6 = vmul.f32 0.7978846, %v344_v2  ;;  %v334_v7 = vmul.f32 %v329_v3, %v329_v3 }
  0xb8   : > { %562 = vtanh.f32 %v347_v4  ;;  %v337_v8 = vmul.f32 %v333_v5, %v315_v0 }
  0xb9   : > { %564 = vtanh.f32 %v348_v6  ;;  %v338_v9 = vmul.f32 %v334_v7, %v329_v3 }
  0xba   : > { %v341_v10 = vmul.f32 0.044715, %v337_v8 }
  0xbb   : > { %v342_v11 = vmul.f32 0.044715, %v338_v9 }
  0xbc   : > { %v345_v12 = vadd.f32 %v341_v10, %v315_v0 }
  0xbd   : > { %v346_v13 = vadd.f32 %v342_v11, %v329_v3 }
  0xbe   : > { %v563_v14 = vpop.eup %562  ;;  %v349_v15 = vmul.f32 0.7978846, %v345_v12 }
  0xbf   : > { %v565_v16 = vpop.eup %564  ;;  %v355_v17 = vadd.f32 1.0, %v563_v14  ;;  %v350_v18 = vmul.f32 0.7978846, %v346_v13 }
  0xc0   : > { %v356_v19 = vadd.f32 1.0, %v565_v16  ;;  %566 = vtanh.f32 %v349_v15 }
  0xc1   : > { %v359_v20 = vmul.f32 0.5, %v355_v17  ;;  %568 = vtanh.f32 %v350_v18 }
  0xc2   : > { %v360_v21 = vmul.f32 0.5, %v356_v19 }
  0xc3   : > { %v363_v22 = vmul.f32 %v359_v20, %v313_v53 }
  0xc4   : > { %v364_v23 = vmul.f32 %v360_v21, %v327_v55 }
  0xc6   : > { %v567_v24 = vpop.eup %566  ;;  %v367_v25 = vpack.c.bf16 %v364_v23, %v363_v22 }
  0xc7   : > { %v569_v26 = vpop.eup %568  ;;  %v357_v27 = vadd.f32 1.0, %v567_v24 }
  0xc8   : > { %369 = vst [vmem:[%s191_s4] sm:$0xff] %v367_v25  ;;  %v358_v28 = vadd.f32 1.0, %v569_v26 }
  0xc9   : > { %v361_v29 = vmul.f32 0.5, %v357_v27 }
  0xca   : > { %v362_v30 = vmul.f32 0.5, %v358_v28 }
  0xcb   : > { %v365_v31 = vmul.f32 %v361_v29, %v315_v0 }
  0xcc   : > { %v366_v32 = vmul.f32 %v362_v30, %v329_v3 }
  0xce   : > { %v368_v33 = vpack.c.bf16 %v366_v32, %v365_v31 }
  0xd0   : > { %370 = vst [vmem:[%s191_s4 + $0x8] sm:$0xff] %v368_v33 }
  0xd1 PF: > { %s14_s12 = sadd.s32 1, %s610_s12  }
  0xd2   : > { %p11_p7 = scmp.ge.s32.totalorder %s14_s12, 4  }
  0xd4   :  { %13 = sbr.rel (!%p11_p7) target bundleno = 1 (0x1), region = 67 }
  0xd9   :  { %395 = vsyncpa [#allocation3], 1 }
  0xda   :  { %397 = vsyncpa [#allocation3 + $0x1], 1 }

// kernel: deberta_classifier_forward.23
= control target key start
LH: loop header
LB: loop body
LE: loop exit
PB: predicated region body
PF: predicated region fallthrough
CT: control target
= control target key end

     0   :  { %8 = vsyncpa [#allocation3], 0  ;;  %s264_s0 = inlined_call_operand.vmem [shape: bf16[2,128], index: 0, kind: input, shape index: {}]   ;;  %s265_s1 = inlined_call_operand.hbm [shape: bf16[128,128], index: 1, kind: input, shape index: {}]   ;;  %s266_s2 = inlined_call_operand.vmem [shape: f32[1,128], index: 2, kind: input, shape index: {}]   ;;  %s267_s3 = inlined_call_operand.hbm [shape: f32[2,128], index: 3, kind: output, shape index: {}]  }
   0x1   :  { %9 = vsyncpa [#allocation4], 0  ;;  %s16_s14 = sshll.u32 %s265_s1, 4  ;;  %s228_s15 = smov [#allocation2]   ;;  %s17_s14 = int_to_ptr.hbm [resolvable:$true] %s16_s14 }
   0x2   :  { %s18_s16 = sshll.u32 %s228_s15, 4  ;;  %s229_s17 = smov 64   ;;  %s19_s16 = int_to_ptr.vmem [resolvable:$true] %s18_s16 }
   0x3   :  { %s230_s18 = smov 4  }
   0x4   :  { %24 = dma.hbm_to_vmem [thread:$0]  %s17_s14, 1024, %s19_s16, [#allocation3], %s229_s17, %s229_s17, %s230_s18  }
   0x5   :  { %224 = dma.done.wait [#allocation3], 1024  }
   0x6   :  { %225 = vsyncadd [#allocation3], 4294966272  ;;  %v170_v0 = vld [vmem:[#allocation2 + $0x38] sm:$0xff]  ;;  %v169_v1 = vld [vmem:[#allocation2 + $0x30] sm:$0xff]  ;;  %s231_s22 = smov [#allocation5]   ;;  %s121_s26 = sshll.u32 %s267_s3, 4  ;;  %s122_s26 = int_to_ptr.hbm [resolvable:$true] %s121_s26 }
   0x7   :  { %100 = vmatpush.bf16.msra.mxu0 %v170_v0  ;;  %v168_v2 = vld [vmem:[#allocation2 + $0x28] sm:$0xff]  ;;  %v167_v3 = vld [vmem:[#allocation2 + $0x20] sm:$0xff]  ;;  %v166_v4 = vld [vmem:[#allocation2 + $0x18] sm:$0xff]  ;;  %s119_s23 = sshll.u32 %s231_s22, 4  ;;  %s120_s23 = int_to_ptr.vmem [resolvable:$true] %s119_s23 }
   0x8   :  { %v165_v5 = vld [vmem:[#allocation2 + $0x10] sm:$0xff]  ;;  %v164_v6 = vld [vmem:[#allocation2 + $0x8] sm:$0xff]  ;;  %v163_v7 = vld [vmem:[#allocation2] sm:$0xff] }
   0x9   :  { %v31_v8 = vld [vmem:[%s264_s0] sm:$0x1] }
   0xa   :  { %v175_v9 = vld [vmem:[%s266_s2] ss:$0 sm:$0xff] }
   0xb   :  { %101 = vmatpush.bf16.msra.mxu0 %v169_v1 }
   0xf   :  { %102 = vmatpush.bf16.msra.mxu0 %v168_v2 }
  0x13   :  { %103 = vmatpush.bf16.msra.mxu0 %v167_v3 }
  0x17   :  { %104 = vmatpush.bf16.msra.mxu0 %v166_v4 }
  0x1b   :  { %105 = vmatpush.bf16.msra.mxu0 %v165_v5 }
  0x1f   :  { %106 = vmatpush.bf16.msra.mxu0 %v164_v6 }
  0x23   :  { %107 = vmatpush.bf16.msra.mxu0 %v163_v7 }
  0x26   :  { %108 = vmatmul.bf16.vlgmr.msra.gmra.mxu0 %v31_v8 }
  0xa3   :  { %v109_v10 = vpop.f32.mrf.mxu0 }
  0xa4   :  { %v110_v11 = vadd.f32 %v175_v9, %v109_v10 }
  0xa6   :  { %113 = vst [vmem:[#allocation5] sm:$0x3] %v110_v11 }
  0xa7   :  { %124 = dma.vmem_to_hbm [thread:$0]  %s120_s23, 32, %s122_s26, [#allocation4]  }
  0xab   :  { %v111_v12 = vpop.f32.mrf.mxu0 }
  0xac   :  { %226 = dma.done.wait [#allocation4], 32  }
  0xad   :  { %227 = vsyncadd [#allocation4], 4294967264 }
  0xae   :  { %129 = vsyncpa [#allocation3], 1 }
  0xaf   :  { %130 = vsyncpa [#allocation4], 1 }

</bundles_post_ra>
